<compile_context>
chip_gen: v5e
topology: v5e:2x2
jax: 0.10.0
libtpu: 0.0.40
codegen_flags: <defaults>
</compile_context>

<pallas_src>
import functools
import math

import jax
import jax.numpy as jnp
from jax.experimental import pallas as pl
from jax.experimental.pallas import tpu as pltpu


def _round_up(x, m):
    return -(-x // m) * m


def _log_beta_coefs(k, beta):
    denom = sum(math.log(beta + i) for i in range(1, k + 2))
    return [math.log(beta + (t + 1)) / denom for t in range(k + 1)]


# ----------------------------------------------------------------------------
# Fused single-kernel path: adjacency + features resident in VMEM, K hops
# unrolled in-kernel.  Used when the whole working set fits comfortably in
# VMEM (budgeted against v7x's 64 MiB physical / 32 MiB default scoped limit).
# ----------------------------------------------------------------------------
def _make_fused_kernel(coefs):
    k = len(coefs) - 1

    def fused_kernel(adj_ref, feat_ref, out_ref, h_ref):
        # adj_ref  : (Np, Np) bf16 VMEM  normalized adjacency, resident
        # feat_ref : (Np, Dp) f32  VMEM  input features
        # out_ref  : (Np, Dp) f32  VMEM  OUT: log-beta weighted sum
        # h_ref    : (Np, Dp) f32  VMEM  scratch: current hop features (f32)
        h_ref[...] = feat_ref[...]
        out_ref[...] = coefs[0] * feat_ref[...]
        for t in range(1, k + 1):            # K is small -> unrolled at trace time
            z = jnp.dot(adj_ref[...], h_ref[...].astype(jnp.bfloat16),
                        preferred_element_type=jnp.float32)
            h_ref[...] = z
            out_ref[...] = out_ref[...] + coefs[t] * z

    return fused_kernel


def _appnp_fused(a_norm_p, feat_p, coefs, *, vmem_limit):
    n_pad, d_pad = feat_p.shape
    k = len(coefs) - 1
    flops = 2 * k * n_pad * n_pad * d_pad
    bytes_accessed = n_pad * n_pad * 2 + 2 * n_pad * d_pad * 4  # adj once + feat + out
    return pl.pallas_call(
        _make_fused_kernel(coefs),
        out_shape=jax.ShapeDtypeStruct((n_pad, d_pad), jnp.float32),
        in_specs=[pl.BlockSpec(memory_space=pltpu.MemorySpace.VMEM),
                  pl.BlockSpec(memory_space=pltpu.MemorySpace.VMEM)],
        out_specs=pl.BlockSpec(memory_space=pltpu.MemorySpace.VMEM),
        scratch_shapes=[pltpu.VMEM((n_pad, d_pad), jnp.float32)],
        compiler_params=pltpu.CompilerParams(vmem_limit_bytes=vmem_limit),
        cost_estimate=pl.CostEstimate(flops=flops, transcendentals=0,
                                      bytes_accessed=bytes_accessed),
    )(a_norm_p, feat_p)


# ----------------------------------------------------------------------------
# Tiled per-hop path for graphs whose adjacency does not fit VMEM.
# ----------------------------------------------------------------------------
def _make_hop_kernel(coef, emit_z):
    """One APPNP hop tile: acc += A_tile @ h_tile ; epilogue adds coef*z to out."""

    def hop_kernel(adj_ref, h_ref, outprev_ref, *rest):
        # adj_ref     : (tm, tk)  bf16  normalized adjacency tile (dst, src)
        # h_ref       : (tk, Dp)  bf16  previous-hop features (contraction slice)
        # outprev_ref : (tm, Dp)  f32   running weighted sum (aliased with out)
        # [z_ref]     : (tm, Dp)  bf16  OUT: this hop's features (skipped on last hop)
        # out_ref     : (tm, Dp)  f32   OUT: updated weighted sum
        # acc_ref     : (tm, Dp)  f32   matmul accumulator scratch
        if emit_z:
            z_ref, out_ref, acc_ref = rest
        else:
            out_ref, acc_ref = rest
        kt = pl.program_id(1)

        @pl.when(kt == 0)
        def _():
            acc_ref[...] = jnp.zeros_like(acc_ref)

        acc_ref[...] += jnp.dot(adj_ref[...], h_ref[...],
                                preferred_element_type=jnp.float32)

        @pl.when(kt == pl.num_programs(1) - 1)
        def _():
            z = acc_ref[...]                           # f32
            if emit_z:
                z_ref[...] = z.astype(jnp.bfloat16)    # next hop's MXU input
            out_ref[...] = outprev_ref[...] + coef * z # f32 elementwise accumulate

    return hop_kernel


def _appnp_hop(a_norm_p, h, out_prev, *, coef, tm, tk, emit_z, vmem_limit):
    n_pad = a_norm_p.shape[0]
    d_pad = h.shape[1]
    grid = (n_pad // tm, n_pad // tk)

    flops = 2 * n_pad * n_pad * d_pad
    bytes_accessed = (n_pad * n_pad * 2                       # adjacency, bf16
                      + (n_pad // tm) * n_pad * d_pad * 2     # h re-streamed per row tile
                      + 2 * n_pad * d_pad * 4                 # out_prev + out, f32
                      + (n_pad * d_pad * 2 if emit_z else 0)) # z, bf16

    out_shape = []
    out_specs = []
    if emit_z:
        out_shape.append(jax.ShapeDtypeStruct((n_pad, d_pad), jnp.bfloat16))
        out_specs.append(pl.BlockSpec((tm, d_pad), lambda i, k: (i, 0)))
    out_shape.append(jax.ShapeDtypeStruct((n_pad, d_pad), jnp.float32))
    out_specs.append(pl.BlockSpec((tm, d_pad), lambda i, k: (i, 0)))

    # Donate the running-sum buffer: out_prev (input 2) -> out.
    aliases = {2: (1 if emit_z else 0)}

    results = pl.pallas_call(
        _make_hop_kernel(coef, emit_z),
        out_shape=tuple(out_shape),
        grid_spec=pltpu.PrefetchScalarGridSpec(
            num_scalar_prefetch=0,
            grid=grid,
            in_specs=[
                pl.BlockSpec((tm, tk), lambda i, k: (i, k)),     # adjacency tile
                pl.BlockSpec((tk, d_pad), lambda i, k: (k, 0)),  # h contraction slice
                pl.BlockSpec((tm, d_pad), lambda i, k: (i, 0)),  # out_prev rows
            ],
            out_specs=tuple(out_specs),
            scratch_shapes=[pltpu.VMEM((tm, d_pad), jnp.float32)],
        ),
        compiler_params=pltpu.CompilerParams(
            dimension_semantics=("parallel", "arbitrary"),
            vmem_limit_bytes=vmem_limit),
        cost_estimate=pl.CostEstimate(flops=flops, transcendentals=0,
                                      bytes_accessed=bytes_accessed),
        input_output_aliases=aliases,
    )(a_norm_p, h, out_prev)

    if emit_z:
        z, out = results
        return z, out
    (out,) = results
    return None, out


# ----------------------------------------------------------------------------
# Wrapper: normalization (done once per graph), padding, path selection.
# ----------------------------------------------------------------------------
@functools.partial(jax.jit, static_argnames=("k", "beta", "tile", "force_tiled"))
def appnp_conv(adj, feat, *, k, beta, tile=512, force_tiled=False):
    """APPNPConv forward with no explicit edge_weight (eval mode)."""
    n, d = feat.shape
    adj = adj.astype(jnp.float32)
    feat = feat.astype(jnp.float32)

    # Degree-based symmetric normalization folded ONCE into the adjacency, then
    # cast to bf16 BEFORE padding (halves pad traffic).  For a static graph the
    # normalized adjacency can be cached by the caller.
    out_deg = jnp.maximum(jnp.sum(adj, axis=0), 1.0)   # out-degree of src j (column sum)
    in_deg = jnp.maximum(jnp.sum(adj, axis=1), 1.0)    # in-degree of dst i (row sum)
    src_norm = jax.lax.rsqrt(out_deg)
    dst_norm = jax.lax.rsqrt(in_deg)
    a_norm = ((dst_norm[:, None] * adj) * src_norm[None, :]).astype(jnp.bfloat16)

    coefs = _log_beta_coefs(k, beta)
    d_pad = _round_up(d, 128)          # lane-dense feature dim
    n_pad128 = _round_up(n, 128)

    # Fused-path working set: bf16 adjacency + f32 feat/out/h-scratch.
    fused_bytes = n_pad128 * n_pad128 * 2 + 3 * n_pad128 * d_pad * 4
    use_fused = (not force_tiled) and fused_bytes <= (20 << 20)  # ~20 MiB -> fits all gens

    if use_fused:
        n_pad = n_pad128
        a_p = jnp.pad(a_norm, ((0, n_pad - n), (0, n_pad - n)))
        feat_p = jnp.pad(feat, ((0, n_pad - n), (0, d_pad - d)))
        vmem_limit = int(min(max(2 * fused_bytes, 32 << 20), 40 << 20))
        out = _appnp_fused(a_p, feat_p, coefs, vmem_limit=vmem_limit)
        return out[:n, :d]

    # ---- Tiled per-hop path ----
    tile = max(128, (min(tile, n_pad128) // 128) * 128)
    if n_pad128 < 2 * tile and tile > 128:
        # Keep >= 2 row tiles so v7x's two TensorCores both get work.
        tile = max(128, ((n_pad128 // 2) // 128) * 128)
    n_pad = _round_up(n, tile)

    a_p = jnp.pad(a_norm, ((0, n_pad - n), (0, n_pad - n)))
    feat_p = jnp.pad(feat, ((0, n_pad - n), (0, d_pad - d)))

    # Double-buffered blocks + scratch budget, with headroom under v7x's 64 MiB.
    vmem_need = (2 * tile * tile * 2 + 2 * tile * d_pad * 2 + 2 * tile * d_pad * 4
                 + 2 * tile * d_pad * 2 + 2 * tile * d_pad * 4 + tile * d_pad * 4)
    vmem_limit = int(min(max(2 * vmem_need, 32 << 20), 48 << 20))

    out = coefs[0] * feat_p                 # f32 running weighted sum (z_0 term)
    h = feat_p.astype(jnp.bfloat16)         # MXU input for hop 1
    # TODO(synk): for very deep K / high-degree graphs, carry h in f32 HBM and
    # cast per-tile in-kernel to avoid bf16 inter-hop rounding accumulation.
    for t in range(1, k + 1):
        h, out = _appnp_hop(a_p, h, out, coef=coefs[t], tm=tile, tk=tile,
                            emit_z=(t < k), vmem_limit=vmem_limit)
    return out[:n, :d]


def appnp_conv_reference(adj, feat, *, k, beta):
    """Pure-JAX f32 reference mirroring the PyTorch forward."""
    n, _ = feat.shape
    out_deg = jnp.maximum(jnp.sum(adj, axis=0), 1.0)
    in_deg = jnp.maximum(jnp.sum(adj, axis=1), 1.0)
    src_norm = jnp.power(out_deg, -0.5).reshape(n, 1)
    dst_norm = jnp.power(in_deg, -0.5).reshape(n, 1)
    z = [feat]
    h = feat
    for _ in range(k):
        h = h * src_norm
        h = adj @ h
        h = h * dst_norm
        z.append(h)
    denom = sum(math.log(beta + i) for i in range(1, len(z) + 1))
    out = jnp.zeros_like(feat)
    for t, zt in enumerate(z):
        out = out + (math.log(beta + (t + 1)) / denom) * zt
    return out


if __name__ == "__main__":
    # Module hyperparameters (dropout / edge_drop are identity at eval time).
    hidden_dim = 32
    k_hops = 3
    alpha = 0.1          # unused in the module's forward (kept for fidelity)
    beta = 1.0

    key = jax.random.PRNGKey(0)
    k_feat, k_adj, k_w, k_feat2, k_adj2 = jax.random.split(key, 5)

    # TODO(synk): self.weights (k+1,), self.attn (Attention), self.softmax and
    # alpha are initialized by the module but never used in its forward pass;
    # initialized here only for shape fidelity.
    weights_param = jax.random.normal(k_w, (k_hops + 1,), dtype=jnp.float32)

    # --- Test 1: small graph -> fused single-kernel path (adjacency in VMEM).
    n1 = 256
    adj1 = (jax.random.uniform(k_adj, (n1, n1)) < 0.15).astype(jnp.float32)
    adj1 = adj1 * (1.0 - jnp.eye(n1, dtype=jnp.float32))   # no self loops
    feat1 = jax.random.normal(k_feat, (n1, hidden_dim), dtype=jnp.float32)

    out1 = jax.block_until_ready(appnp_conv(adj1, feat1, k=k_hops, beta=beta))
    ref1 = appnp_conv_reference(adj1, feat1, k=k_hops, beta=beta)
    assert out1.shape == (n1, hidden_dim)
    assert jnp.allclose(out1, ref1, atol=1e-2, rtol=1e-2), "fused path mismatch"

    # --- Test 2: exercise the tiled large-graph path (forced) with 512 tiles.
    n2 = 1024
    adj2 = (jax.random.uniform(k_adj2, (n2, n2)) < 0.05).astype(jnp.float32)
    adj2 = adj2 * (1.0 - jnp.eye(n2, dtype=jnp.float32))
    feat2 = jax.random.normal(k_feat2, (n2, hidden_dim), dtype=jnp.float32)

    out2 = jax.block_until_ready(
        appnp_conv(adj2, feat2, k=k_hops, beta=beta, tile=512, force_tiled=True))
    ref2 = appnp_conv_reference(adj2, feat2, k=k_hops, beta=beta)
    assert out2.shape == (n2, hidden_dim)
    assert jnp.allclose(out2, ref2, atol=3e-2, rtol=3e-2), "tiled path mismatch"

    print("KERNEL_OK")
</pallas_src>

<mosaic_0001>
module attributes {stable_mosaic.version = 11 : i64} {
  func.func @fused_kernel(%arg0: memref<256x256xbf16, #tpu.memory_space<vmem>>, %arg1: memref<256x128xf32, #tpu.memory_space<vmem>>, %arg2: memref<256x128xf32, #tpu.memory_space<vmem>>, %arg3: memref<256x128xf32, #tpu.memory_space<vmem>>) attributes {dimension_semantics = [], scalar_prefetch = 0 : i64, scratch_operands = 1 : i64, tpu.core_type = #tpu.core_type<tc>} {
    %c0 = arith.constant 0 : index
    %c0_0 = arith.constant 0 : index
    %0 = vector.load %arg1[%c0, %c0_0] : memref<256x128xf32, #tpu.memory_space<vmem>>, vector<256x128xf32>
    %c0_1 = arith.constant 0 : index
    %c0_2 = arith.constant 0 : index
    %1 = vector.load %arg3[%c0_1, %c0_2] : memref<256x128xf32, #tpu.memory_space<vmem>>, vector<256x128xf32>
    tpu.vector_store %arg3[%c0_1, %c0_2], %0 {strides = array<i32>} : memref<256x128xf32, #tpu.memory_space<vmem>>, vector<256x128xf32>,
    %c0_3 = arith.constant 0 : index
    %c0_4 = arith.constant 0 : index
    %2 = vector.load %arg1[%c0_3, %c0_4] : memref<256x128xf32, #tpu.memory_space<vmem>>, vector<256x128xf32>
    %cst = arith.constant 0.144782946 : f32
    %3 = vector.broadcast %cst : f32 to vector<256x128xf32>
    %4 = arith.mulf %3, %2 : vector<256x128xf32>
    %c0_5 = arith.constant 0 : index
    %c0_6 = arith.constant 0 : index
    %5 = vector.load %arg2[%c0_5, %c0_6] : memref<256x128xf32, #tpu.memory_space<vmem>>, vector<256x128xf32>
    tpu.vector_store %arg2[%c0_5, %c0_6], %4 {strides = array<i32>} : memref<256x128xf32, #tpu.memory_space<vmem>>, vector<256x128xf32>,
    %c0_7 = arith.constant 0 : index
    %c0_8 = arith.constant 0 : index
    %6 = vector.load %arg0[%c0_7, %c0_8] : memref<256x256xbf16, #tpu.memory_space<vmem>>, vector<256x256xbf16>
    %c0_9 = arith.constant 0 : index
    %c0_10 = arith.constant 0 : index
    %7 = vector.load %arg3[%c0_9, %c0_10] : memref<256x128xf32, #tpu.memory_space<vmem>>, vector<256x128xf32>
    %8 = arith.truncf %7 : vector<256x128xf32> to vector<256x128xbf16>
    %cst_11 = arith.constant dense<0.000000e+00> : vector<256x128xf32>
    %9 = tpu.matmul %6, %8, %cst_11 {dimension_numbers = #tpu.dot_dimension_numbers<[1], [0], [0], [1], [0, 0, 1, 1], [], []>} : vector<256x256xbf16>, vector<256x128xbf16>, vector<256x128xf32> -> vector<256x128xf32>
    %c0_12 = arith.constant 0 : index
    %c0_13 = arith.constant 0 : index
    %10 = vector.load %arg3[%c0_12, %c0_13] : memref<256x128xf32, #tpu.memory_space<vmem>>, vector<256x128xf32>
    tpu.vector_store %arg3[%c0_12, %c0_13], %9 {strides = array<i32>} : memref<256x128xf32, #tpu.memory_space<vmem>>, vector<256x128xf32>,
    %c0_14 = arith.constant 0 : index
    %c0_15 = arith.constant 0 : index
    %11 = vector.load %arg2[%c0_14, %c0_15] : memref<256x128xf32, #tpu.memory_space<vmem>>, vector<256x128xf32>
    %cst_16 = arith.constant 0.229475543 : f32
    %12 = vector.broadcast %cst_16 : f32 to vector<256x128xf32>
    %13 = arith.mulf %12, %9 : vector<256x128xf32>
    %14 = arith.addf %11, %13 : vector<256x128xf32>
    %c0_17 = arith.constant 0 : index
    %c0_18 = arith.constant 0 : index
    %15 = vector.load %arg2[%c0_17, %c0_18] : memref<256x128xf32, #tpu.memory_space<vmem>>, vector<256x128xf32>
    tpu.vector_store %arg2[%c0_17, %c0_18], %14 {strides = array<i32>} : memref<256x128xf32, #tpu.memory_space<vmem>>, vector<256x128xf32>,
    %c0_19 = arith.constant 0 : index
    %c0_20 = arith.constant 0 : index
    %16 = vector.load %arg0[%c0_19, %c0_20] : memref<256x256xbf16, #tpu.memory_space<vmem>>, vector<256x256xbf16>
    %c0_21 = arith.constant 0 : index
    %c0_22 = arith.constant 0 : index
    %17 = vector.load %arg3[%c0_21, %c0_22] : memref<256x128xf32, #tpu.memory_space<vmem>>, vector<256x128xf32>
    %18 = arith.truncf %17 : vector<256x128xf32> to vector<256x128xbf16>
    %cst_23 = arith.constant dense<0.000000e+00> : vector<256x128xf32>
    %19 = tpu.matmul %16, %18, %cst_23 {dimension_numbers = #tpu.dot_dimension_numbers<[1], [0], [0], [1], [0, 0, 1, 1], [], []>} : vector<256x256xbf16>, vector<256x128xbf16>, vector<256x128xf32> -> vector<256x128xf32>
    %c0_24 = arith.constant 0 : index
    %c0_25 = arith.constant 0 : index
    %20 = vector.load %arg3[%c0_24, %c0_25] : memref<256x128xf32, #tpu.memory_space<vmem>>, vector<256x128xf32>
    tpu.vector_store %arg3[%c0_24, %c0_25], %19 {strides = array<i32>} : memref<256x128xf32, #tpu.memory_space<vmem>>, vector<256x128xf32>,
    %c0_26 = arith.constant 0 : index
    %c0_27 = arith.constant 0 : index
    %21 = vector.load %arg2[%c0_26, %c0_27] : memref<256x128xf32, #tpu.memory_space<vmem>>, vector<256x128xf32>
    %cst_28 = arith.constant 0.289565891 : f32
    %22 = vector.broadcast %cst_28 : f32 to vector<256x128xf32>
    %23 = arith.mulf %22, %19 : vector<256x128xf32>
    %24 = arith.addf %21, %23 : vector<256x128xf32>
    %c0_29 = arith.constant 0 : index
    %c0_30 = arith.constant 0 : index
    %25 = vector.load %arg2[%c0_29, %c0_30] : memref<256x128xf32, #tpu.memory_space<vmem>>, vector<256x128xf32>
    tpu.vector_store %arg2[%c0_29, %c0_30], %24 {strides = array<i32>} : memref<256x128xf32, #tpu.memory_space<vmem>>, vector<256x128xf32>,
    %c0_31 = arith.constant 0 : index
    %c0_32 = arith.constant 0 : index
    %26 = vector.load %arg0[%c0_31, %c0_32] : memref<256x256xbf16, #tpu.memory_space<vmem>>, vector<256x256xbf16>
    %c0_33 = arith.constant 0 : index
    %c0_34 = arith.constant 0 : index
    %27 = vector.load %arg3[%c0_33, %c0_34] : memref<256x128xf32, #tpu.memory_space<vmem>>, vector<256x128xf32>
    %28 = arith.truncf %27 : vector<256x128xf32> to vector<256x128xbf16>
    %cst_35 = arith.constant dense<0.000000e+00> : vector<256x128xf32>
    %29 = tpu.matmul %26, %28, %cst_35 {dimension_numbers = #tpu.dot_dimension_numbers<[1], [0], [0], [1], [0, 0, 1, 1], [], []>} : vector<256x256xbf16>, vector<256x128xbf16>, vector<256x128xf32> -> vector<256x128xf32>
    %c0_36 = arith.constant 0 : index
    %c0_37 = arith.constant 0 : index
    %30 = vector.load %arg3[%c0_36, %c0_37] : memref<256x128xf32, #tpu.memory_space<vmem>>, vector<256x128xf32>
    tpu.vector_store %arg3[%c0_36, %c0_37], %29 {strides = array<i32>} : memref<256x128xf32, #tpu.memory_space<vmem>>, vector<256x128xf32>,
    %c0_38 = arith.constant 0 : index
    %c0_39 = arith.constant 0 : index
    %31 = vector.load %arg2[%c0_38, %c0_39] : memref<256x128xf32, #tpu.memory_space<vmem>>, vector<256x128xf32>
    %cst_40 = arith.constant 0.336175591 : f32
    %32 = vector.broadcast %cst_40 : f32 to vector<256x128xf32>
    %33 = arith.mulf %32, %29 : vector<256x128xf32>
    %34 = arith.addf %31, %33 : vector<256x128xf32>
    %c0_41 = arith.constant 0 : index
    %c0_42 = arith.constant 0 : index
    %35 = vector.load %arg2[%c0_41, %c0_42] : memref<256x128xf32, #tpu.memory_space<vmem>>, vector<256x128xf32>
    tpu.vector_store %arg2[%c0_41, %c0_42], %34 {strides = array<i32>} : memref<256x128xf32, #tpu.memory_space<vmem>>, vector<256x128xf32>,
    return
  }
}

</mosaic_0001>

<bundles_post_ra>
// kernel: appnp_conv.1
= control target key start
LH: loop header
LB: loop body
LE: loop exit
PB: predicated region body
PF: predicated region fallthrough
CT: control target
= control target key end

     0   :  { %s3701_s1 = inlined_call_operand.vmem [shape: f32[256,128], index: 1, kind: input, shape index: {}]   ;;  %s3702_s0 = inlined_call_operand.vmem [shape: bf16[256,256], index: 0, kind: input, shape index: {}]   ;;  %s3703_s2 = inlined_call_operand.vmem [shape: f32[256,128], index: 2, kind: output, shape index: {}]  }
   0x1   :  { %v25_v0 = vld [vmem:[%s3701_s1 + $0x70] sm:$0xff]  ;;  %v26_v1 = vld [vmem:[%s3701_s1 + $0x78] sm:$0xff]  ;;  %v23_v5 = vld [vmem:[%s3701_s1 + $0x60] sm:$0xff] }
   0x2   :  { %v41_v2 = vld [vmem:[%s3701_s1 + $0xf0] sm:$0xff]  ;;  %v242_v3 = vpack.c.bf16 %v26_v1, %v25_v0  ;;  %v42_v4 = vld [vmem:[%s3701_s1 + $0xf8] sm:$0xff]  ;;  %v24_v6 = vld [vmem:[%s3701_s1 + $0x68] sm:$0xff] }
   0x3   :  { %v250_v7 = vpack.c.bf16 %v42_v4, %v41_v2  ;;  %v39_v8 = vld [vmem:[%s3701_s1 + $0xe0] sm:$0xff]  ;;  %v40_v9 = vld [vmem:[%s3701_s1 + $0xe8] sm:$0xff]  ;;  %v241_v10 = vpack.c.bf16 %v24_v6, %v23_v5  ;;  %v21_v12 = vld [vmem:[%s3701_s1 + $0x50] sm:$0xff] }
   0x4   :  { %411 = vmatpush.bf16.msra.mxu0 %v242_v3  ;;  %2389 = vmatpush.bf16.msra.mxu2 %v242_v3  ;;  %v249_v11 = vpack.c.bf16 %v40_v9, %v39_v8  ;;  %v22_v13 = vld [vmem:[%s3701_s1 + $0x58] sm:$0xff]  ;;  %v37_v14 = vld [vmem:[%s3701_s1 + $0xd0] sm:$0xff]  ;;  %v19_v18 = vld [vmem:[%s3701_s1 + $0x40] sm:$0xff] }
   0x5   :  { %500 = vmatpush.bf16.msra.mxu1 %v250_v7  ;;  %2397 = vmatpush.bf16.msra.mxu3 %v250_v7  ;;  %v38_v15 = vld [vmem:[%s3701_s1 + $0xd8] sm:$0xff]  ;;  %v240_v16 = vpack.c.bf16 %v22_v13, %v21_v12  ;;  %v20_v19 = vld [vmem:[%s3701_s1 + $0x48] sm:$0xff]  ;;  %v35_v20 = vld [vmem:[%s3701_s1 + $0xc0] sm:$0xff] }
   0x6   :  { %v248_v17 = vpack.c.bf16 %v38_v15, %v37_v14  ;;  %v36_v21 = vld [vmem:[%s3701_s1 + $0xc8] sm:$0xff]  ;;  %v239_v22 = vpack.c.bf16 %v20_v19, %v19_v18  ;;  %v2487_v24 = vld [vmem:[%s3701_s1 + $0x30] sm:$0xff]  ;;  %v2492_v25 = vld [vmem:[%s3701_s1 + $0x38] sm:$0xff] }
   0x7   :  { %v247_v23 = vpack.c.bf16 %v36_v21, %v35_v20  ;;  %3707 = vst [vmem:[#allocation3_spill] sm:$0xff] %v2487_v24  ;;  %v2497_v26 = vld [vmem:[%s3701_s1 + $0xb0] sm:$0xff]  ;;  %v34_v27 = vld [vmem:[%s3701_s1 + $0xb8] sm:$0xff]  ;;  %v238_v28 = vpack.c.bf16 %v2492_v25, %v2487_v24  ;;  %v2508_v30 = vld [vmem:[%s3701_s1 + $0x20] sm:$0xff] }
   0x8   :  { %412 = vmatpush.bf16.msra.mxu0 %v241_v10  ;;  %2390 = vmatpush.bf16.msra.mxu2 %v241_v10  ;;  %3708 = vst [vmem:[#allocation4_spill] sm:$0xff] %v2492_v25  ;;  %v246_v29 = vpack.c.bf16 %v34_v27, %v2497_v26  ;;  %v2513_v31 = vld [vmem:[%s3701_s1 + $0x28] sm:$0xff]  ;;  %v2518_v32 = vld [vmem:[%s3701_s1 + $0xa0] sm:$0xff]  ;;  %v2532_v36 = vld [vmem:[%s3701_s1 + $0x10] sm:$0xff] }
   0x9   :  { %501 = vmatpush.bf16.msra.mxu1 %v249_v11  ;;  %2398 = vmatpush.bf16.msra.mxu3 %v249_v11  ;;  %3709 = vst [vmem:[#allocation5_spill] sm:$0xff] %v2513_v31  ;;  %v2523_v33 = vld [vmem:[%s3701_s1 + $0xa8] sm:$0xff]  ;;  %v237_v34 = vpack.c.bf16 %v2513_v31, %v2508_v30  ;;  %v2537_v37 = vld [vmem:[%s3701_s1 + $0x18] sm:$0xff]  ;;  %v2542_v38 = vld [vmem:[%s3701_s1 + $0x90] sm:$0xff] }
   0xa   :  { %v245_v35 = vpack.c.bf16 %v2523_v33, %v2518_v32  ;;  %v2547_v39 = vld [vmem:[%s3701_s1 + $0x98] sm:$0xff]  ;;  %v236_v40 = vpack.c.bf16 %v2537_v37, %v2532_v36  ;;  %v2556_v42 = vld [vmem:[%s3701_s1] sm:$0xff]  ;;  %v2561_v43 = vld [vmem:[%s3701_s1 + $0x8] sm:$0xff] }
   0xb   :  { %v244_v41 = vpack.c.bf16 %v2547_v39, %v2542_v38  ;;  %v2566_v44 = vld [vmem:[%s3701_s1 + $0x80] sm:$0xff]  ;;  %v2571_v45 = vld [vmem:[%s3701_s1 + $0x88] sm:$0xff]  ;;  %v235_v48 = vpack.c.bf16 %v2561_v43, %v2556_v42  ;;  %v1919_v60 = vld [vmem:[%s3702_s0 + $0x10] sm:$0xf] }
   0xc   :  { %413 = vmatpush.bf16.msra.mxu0 %v240_v16  ;;  %2391 = vmatpush.bf16.msra.mxu2 %v240_v16  ;;  %v1911_v46 = vld [vmem:[%s3702_s0] sm:$0xf]  ;;  %v2294_v47 = vld [vmem:[%s3702_s0 + $0x4] sm:$0xf0]  ;;  %v2293_v51 = vld [vmem:[%s3702_s0 + $0x4] sm:$0xf]  ;;  %v243_v52 = vpack.c.bf16 %v2571_v45, %v2566_v44 }
   0xd   :  { %502 = vmatpush.bf16.msra.mxu1 %v248_v17  ;;  %2399 = vmatpush.bf16.msra.mxu3 %v248_v17  ;;  %v1975_v49 = vld [vmem:[%s3702_s0 + $0x80] sm:$0xf]  ;;  %v2310_v50 = vld [vmem:[%s3702_s0 + $0x84] sm:$0xf0]  ;;  %v1913_v53 = vld [vmem:[%s3702_s0 + $0x8] sm:$0xf0]  ;;  %v1912_v56 = vor.u32 %v2294_v47, %v1911_v46 }
   0xe   :  { %v2309_v54 = vld [vmem:[%s3702_s0 + $0x84] sm:$0xf]  ;;  %v1977_v55 = vld [vmem:[%s3702_s0 + $0x88] sm:$0xf0]  ;;  %v1976_v57 = vor.u32 %v2310_v50, %v1975_v49  ;;  %v1916_v58 = vor.u32 %v2293_v51, %v1913_v53  ;;  %v2296_v61 = vld [vmem:[%s3702_s0 + $0x14] sm:$0xf0] }
   0xf   :  { %v1980_v59 = vor.u32 %v2309_v54, %v1977_v55  ;;  %v1983_v62 = vld [vmem:[%s3702_s0 + $0x90] sm:$0xf]  ;;  %v2312_v63 = vld [vmem:[%s3702_s0 + $0x94] sm:$0xf0]  ;;  %v2295_v0 = vld [vmem:[%s3702_s0 + $0x14] sm:$0xf]  ;;  %v1920_v4 = vor.u32 %v2296_v61, %v1919_v60 }
  0x10   :  { %414 = vmatpush.bf16.msra.mxu0 %v239_v22  ;;  %2392 = vmatpush.bf16.msra.mxu2 %v239_v22  ;;  %v1921_v1 = vld [vmem:[%s3702_s0 + $0x18] sm:$0xf0]  ;;  %v2311_v2 = vld [vmem:[%s3702_s0 + $0x94] sm:$0xf]  ;;  %v1984_v5 = vor.u32 %v2312_v63, %v1983_v62  ;;  %v1927_v8 = vld [vmem:[%s3702_s0 + $0x20] sm:$0xf] }
  0x11   :  { %503 = vmatpush.bf16.msra.mxu1 %v247_v23  ;;  %2400 = vmatpush.bf16.msra.mxu3 %v247_v23  ;;  %v1985_v3 = vld [vmem:[%s3702_s0 + $0x98] sm:$0xf0]  ;;  %v1924_v6 = vor.u32 %v2295_v0, %v1921_v1  ;;  %v2298_v9 = vld [vmem:[%s3702_s0 + $0x24] sm:$0xf0]  ;;  %v1991_v10 = vld [vmem:[%s3702_s0 + $0xa0] sm:$0xf] }
  0x12   :  { %v1988_v7 = vor.u32 %v2311_v2, %v1985_v3  ;;  %v2314_v11 = vld [vmem:[%s3702_s0 + $0xa4] sm:$0xf0]  ;;  %v2297_v12 = vld [vmem:[%s3702_s0 + $0x24] sm:$0xf]  ;;  %v1929_v13 = vld [vmem:[%s3702_s0 + $0x28] sm:$0xf0]  ;;  %v1928_v16 = vor.u32 %v2298_v9, %v1927_v8 }
  0x13   :  { %v2313_v14 = vld [vmem:[%s3702_s0 + $0xa4] sm:$0xf]  ;;  %v1993_v15 = vld [vmem:[%s3702_s0 + $0xa8] sm:$0xf0]  ;;  %v1992_v17 = vor.u32 %v2314_v11, %v1991_v10  ;;  %v1932_v18 = vor.u32 %v2297_v12, %v1929_v13  ;;  %v1935_v20 = vld [vmem:[%s3702_s0 + $0x30] sm:$0xf] }
  0x14   :  { %415 = vmatpush.bf16.msra.mxu0 %v238_v28  ;;  %2393 = vmatpush.bf16.msra.mxu2 %v238_v28  ;;  %v1996_v19 = vor.u32 %v2313_v14, %v1993_v15  ;;  %v2300_v21 = vld [vmem:[%s3702_s0 + $0x34] sm:$0xf0]  ;;  %v1999_v22 = vld [vmem:[%s3702_s0 + $0xb0] sm:$0xf]  ;;  %v2299_v27 = vld [vmem:[%s3702_s0 + $0x34] sm:$0xf] }
  0x15   :  { %504 = vmatpush.bf16.msra.mxu1 %v246_v29  ;;  %2401 = vmatpush.bf16.msra.mxu3 %v246_v29  ;;  %v2316_v23 = vld [vmem:[%s3702_s0 + $0xb4] sm:$0xf0]  ;;  %v1937_v28 = vld [vmem:[%s3702_s0 + $0x38] sm:$0xf0]  ;;  %v2315_v29 = vld [vmem:[%s3702_s0 + $0xb4] sm:$0xf] }
  0x16   :  { %v1943_v47 = vld [vmem:[%s3702_s0 + $0x40] sm:$0xf]  ;;  %v2318_v50 = vld [vmem:[%s3702_s0 + $0xc4] sm:$0xf0]  ;;  %v2301_v51 = vld [vmem:[%s3702_s0 + $0x44] sm:$0xf] }
  0x17   :  { %v2007_v49 = vld [vmem:[%s3702_s0 + $0xc0] sm:$0xf]  ;;  %v2317_v53 = vld [vmem:[%s3702_s0 + $0xc4] sm:$0xf]  ;;  %v2009_v54 = vld [vmem:[%s3702_s0 + $0xc8] sm:$0xf0] }
  0x18   :  { %416 = vmatpush.bf16.msra.mxu0 %v237_v34  ;;  %2394 = vmatpush.bf16.msra.mxu2 %v237_v34  ;;  %v2001_v34 = vld [vmem:[%s3702_s0 + $0xb8] sm:$0xf0]  ;;  %v2304_v60 = vld [vmem:[%s3702_s0 + $0x54] sm:$0xf0]  ;;  %v2015_v61 = vld [vmem:[%s3702_s0 + $0xd0] sm:$0xf] }
  0x19   :  { %505 = vmatpush.bf16.msra.mxu1 %v245_v35  ;;  %2402 = vmatpush.bf16.msra.mxu3 %v245_v35  ;;  %v1936_v35 = vor.u32 %v2300_v21, %v1935_v20  ;;  %v2004_v46 = vor.u32 %v2315_v29, %v2001_v34  ;;  %v2320_v62 = vld [vmem:[%s3702_s0 + $0xd4] sm:$0xf0]  ;;  %v2303_v63 = vld [vmem:[%s3702_s0 + $0x54] sm:$0xf]  ;;  %v1953_v0 = vld [vmem:[%s3702_s0 + $0x58] sm:$0xf0] }
  0x1a   :  { %v2319_v1 = vld [vmem:[%s3702_s0 + $0xd4] sm:$0xf]  ;;  %v2017_v2 = vld [vmem:[%s3702_s0 + $0xd8] sm:$0xf0]  ;;  %v2306_v8 = vld [vmem:[%s3702_s0 + $0x64] sm:$0xf0] }
  0x1b   :  { %v2023_v9 = vld [vmem:[%s3702_s0 + $0xe0] sm:$0xf]  ;;  %v2322_v10 = vld [vmem:[%s3702_s0 + $0xe4] sm:$0xf0]  ;;  %v2305_v11 = vld [vmem:[%s3702_s0 + $0x64] sm:$0xf] }
  0x1c   :  { %417 = vmatpush.bf16.msra.mxu0 %v236_v40  ;;  %2395 = vmatpush.bf16.msra.mxu2 %v236_v40  ;;  %v2000_v40 = vor.u32 %v2316_v23, %v1999_v22  ;;  %v1961_v12 = vld [vmem:[%s3702_s0 + $0x68] sm:$0xf0]  ;;  %v2321_v13 = vld [vmem:[%s3702_s0 + $0xe4] sm:$0xf]  ;;  %v2308_v20 = vld [vmem:[%s3702_s0 + $0x74] sm:$0xf0] }
  0x1d   :  { %506 = vmatpush.bf16.msra.mxu1 %v244_v41  ;;  %2403 = vmatpush.bf16.msra.mxu3 %v244_v41  ;;  %v1940_v41 = vor.u32 %v2299_v27, %v1937_v28  ;;  %v2025_v14 = vld [vmem:[%s3702_s0 + $0xe8] sm:$0xf0]  ;;  %v2031_v21 = vld [vmem:[%s3702_s0 + $0xf0] sm:$0xf]  ;;  %v2324_v22 = vld [vmem:[%s3702_s0 + $0xf4] sm:$0xf0] }
  0x1e   :  { %v2307_v23 = vld [vmem:[%s3702_s0 + $0x74] sm:$0xf]  ;;  %v1969_v27 = vld [vmem:[%s3702_s0 + $0x78] sm:$0xf0] }
  0x1f   :  { %v2323_v28 = vld [vmem:[%s3702_s0 + $0xf4] sm:$0xf]  ;;  %v2033_v29 = vld [vmem:[%s3702_s0 + $0xf8] sm:$0xf0] }
  0x20   :  { %418 = vmatpush.bf16.msra.mxu0 %v235_v48  ;;  %2396 = vmatpush.bf16.msra.mxu2 %v235_v48  ;;  %v2302_v48 = vld [vmem:[%s3702_s0 + $0x44] sm:$0xf0] }
  0x21   :  { %507 = vmatpush.bf16.msra.mxu1 %v243_v52  ;;  %2404 = vmatpush.bf16.msra.mxu3 %v243_v52  ;;  %v1945_v52 = vld [vmem:[%s3702_s0 + $0x48] sm:$0xf0]  ;;  %v1944_v55 = vor.u32 %v2302_v48, %v1943_v47 }
  0x23   :  { %419 = vmatmul.bf16.vlgmr.msra.gmra.mxu0 %v1912_v56  ;;  %459 = vmatmul.bf16.vlgmr.msra.gmra.mxu2 %v1976_v57  ;;  %v2008_v56 = vor.u32 %v2318_v50, %v2007_v49  ;;  %v1948_v57 = vor.u32 %v2301_v51, %v1945_v52  ;;  %v123_v51 = vmul.f32 0.14478295, %v2566_v44 }
  0x24   :  { %508 = vmatmul.bf16.vlgmr.msra.gmra.mxu1 %v1916_v58  ;;  %548 = vmatmul.bf16.vlgmr.msra.gmra.mxu3 %v1980_v59  ;;  %v2012_v58 = vor.u32 %v2317_v53, %v2009_v54  ;;  %v1951_v59 = vld [vmem:[%s3702_s0 + $0x50] sm:$0xf] }
  0x25   :  { %v1952_v3 = vor.u32 %v2304_v60, %v1951_v59  ;;  %v124_v59 = vmul.f32 0.14478295, %v2571_v45  ;;  %v125_v45 = vmul.f32 0.14478295, %v2542_v38 }
  0x33   :  { %424 = vmatmul.bf16.gmra.mxu0 %v1920_v4  ;;  %464 = vmatmul.bf16.gmra.mxu2 %v1984_v5  ;;  %v2016_v4 = vor.u32 %v2320_v62, %v2015_v61  ;;  %v1956_v5 = vor.u32 %v2303_v63, %v1953_v0 }
  0x34   :  { %513 = vmatmul.bf16.gmra.mxu1 %v1924_v6  ;;  %553 = vmatmul.bf16.gmra.mxu3 %v1988_v7  ;;  %v2020_v6 = vor.u32 %v2319_v1, %v2017_v2  ;;  %v1959_v7 = vld [vmem:[%s3702_s0 + $0x60] sm:$0xf] }
  0x35   :  { %v1960_v15 = vor.u32 %v2306_v8, %v1959_v7 }
  0x43   :  { %429 = vmatmul.bf16.gmra.mxu0 %v1928_v16  ;;  %469 = vmatmul.bf16.gmra.mxu2 %v1992_v17  ;;  %v2024_v16 = vor.u32 %v2322_v10, %v2023_v9  ;;  %v1964_v17 = vor.u32 %v2305_v11, %v1961_v12  ;;  %v126_v11 = vmul.f32 0.14478295, %v2547_v39  ;;  %v127_v39 = vmul.f32 0.14478295, %v2518_v32 }
  0x44   :  { %518 = vmatmul.bf16.gmra.mxu1 %v1932_v18  ;;  %558 = vmatmul.bf16.gmra.mxu3 %v1996_v19  ;;  %v2028_v18 = vor.u32 %v2321_v13, %v2025_v14  ;;  %v1967_v19 = vld [vmem:[%s3702_s0 + $0x70] sm:$0xf] }
  0x45   :  { %v1968_v34 = vor.u32 %v2308_v20, %v1967_v19 }
  0x53   :  { %434 = vmatmul.bf16.gmra.mxu0 %v1936_v35  ;;  %474 = vmatmul.bf16.gmra.mxu2 %v2000_v40  ;;  %v2032_v35 = vor.u32 %v2324_v22, %v2031_v21  ;;  %v1972_v40 = vor.u32 %v2307_v23, %v1969_v27 }
  0x54   :  { %523 = vmatmul.bf16.gmra.mxu1 %v1940_v41  ;;  %563 = vmatmul.bf16.gmra.mxu3 %v2004_v46  ;;  %v2036_v41 = vor.u32 %v2323_v28, %v2033_v29 }
  0x63   :  { %439 = vmatmul.bf16.gmra.mxu0 %v1944_v55  ;;  %479 = vmatmul.bf16.gmra.mxu2 %v2008_v56 }
  0x64   :  { %528 = vmatmul.bf16.gmra.mxu1 %v1948_v57  ;;  %568 = vmatmul.bf16.gmra.mxu3 %v2012_v58 }
  0x73   :  { %444 = vmatmul.bf16.gmra.mxu0 %v1952_v3  ;;  %484 = vmatmul.bf16.gmra.mxu2 %v2016_v4 }
  0x74   :  { %533 = vmatmul.bf16.gmra.mxu1 %v1956_v5  ;;  %573 = vmatmul.bf16.gmra.mxu3 %v2020_v6 }
  0x83   :  { %449 = vmatmul.bf16.gmra.mxu0 %v1960_v15  ;;  %489 = vmatmul.bf16.gmra.mxu2 %v2024_v16 }
  0x84   :  { %538 = vmatmul.bf16.gmra.mxu1 %v1964_v17  ;;  %578 = vmatmul.bf16.gmra.mxu3 %v2028_v18 }
  0x93   :  { %454 = vmatmul.bf16.gmra.mxu0 %v1968_v34  ;;  %494 = vmatmul.bf16.gmra.mxu2 %v2032_v35  ;;  %v128_v34 = vmul.f32 0.14478295, %v2523_v33  ;;  %v129_v33 = vmul.f32 0.14478295, %v2497_v26 }
  0x94   :  { %543 = vmatmul.bf16.gmra.mxu1 %v1972_v40  ;;  %583 = vmatmul.bf16.gmra.mxu3 %v2036_v41 }
  0xa0   :  { %v420_v46 = vpop.f32.mrf.mxu0 }
  0xa1   :  { %v509_v47 = vpop.f32.mrf.mxu1 }
  0xa2   :  { %v2769_v48 = vadd.f32 %v509_v47, %v420_v46 }
  0xa6   :  { %v460_v49 = vpop.f32.mrf.mxu2 }
  0xa7   :  { %v549_v50 = vpop.f32.mrf.mxu3 }
  0xa8   :  { %v2772_v52 = vadd.f32 %v549_v50, %v460_v49  ;;  %v2774_v53 = vpop.f32.mrf.mxu0 }
  0xa9   :  { %v2776_v54 = vpop.f32.mrf.mxu1 }
  0xaa   :  { %v669_v55 = vmul.f32 0.22947554, %v2772_v52 }
  0xac   :  { %v701_v56 = vadd.f32 %v669_v55, %v123_v51 }
  0xae   :  { %733 = vst [vmem:[%s3703_s2 + $0x80] sm:$0xff] %v701_v56  ;;  %v462_v57 = vpop.f32.mrf.mxu2 }
  0xaf   :  { %v551_v58 = vpop.f32.mrf.mxu3 }
  0xb0   :  { %v2783_v60 = vadd.f32 %v551_v58, %v462_v57  ;;  %v425_v44 = vpop.f32.mrf.mxu0 }
  0xb1   :  { %v514_v61 = vpop.f32.mrf.mxu1 }
  0xb2   :  { %v670_v62 = vmul.f32 0.22947554, %v2783_v60  ;;  %v2786_v63 = vadd.f32 %v514_v61, %v425_v44 }
  0xb4   :  { %v702_v1 = vadd.f32 %v670_v62, %v124_v59 }
  0xb6   :  { %734 = vst [vmem:[%s3703_s2 + $0x88] sm:$0xff] %v702_v1  ;;  %v465_v2 = vpop.f32.mrf.mxu2 }
  0xb7   :  { %v554_v3 = vpop.f32.mrf.mxu3 }
  0xb8   :  { %v2794_v4 = vadd.f32 %v554_v3, %v465_v2  ;;  %v2796_v5 = vpop.f32.mrf.mxu0 }
  0xb9   :  { %v2798_v6 = vpop.f32.mrf.mxu1 }
  0xba   :  { %v671_v7 = vmul.f32 0.22947554, %v2794_v4 }
  0xbc   :  { %v703_v8 = vadd.f32 %v671_v7, %v125_v45 }
  0xbe   :  { %735 = vst [vmem:[%s3703_s2 + $0x90] sm:$0xff] %v703_v8  ;;  %v467_v9 = vpop.f32.mrf.mxu2 }
  0xbf   :  { %v556_v10 = vpop.f32.mrf.mxu3 }
  0xc0   :  { %v2805_v12 = vadd.f32 %v556_v10, %v467_v9  ;;  %v430_v38 = vpop.f32.mrf.mxu0 }
  0xc1   :  { %v519_v13 = vpop.f32.mrf.mxu1 }
  0xc2   :  { %v672_v14 = vmul.f32 0.22947554, %v2805_v12  ;;  %v2808_v15 = vadd.f32 %v519_v13, %v430_v38 }
  0xc4   :  { %v704_v17 = vadd.f32 %v672_v14, %v126_v11 }
  0xc6   :  { %736 = vst [vmem:[%s3703_s2 + $0x98] sm:$0xff] %v704_v17  ;;  %v470_v18 = vpop.f32.mrf.mxu2 }
  0xc7   :  { %v559_v19 = vpop.f32.mrf.mxu3 }
  0xc8   :  { %v2816_v20 = vadd.f32 %v559_v19, %v470_v18  ;;  %v2818_v21 = vpop.f32.mrf.mxu0 }
  0xc9   :  { %v2820_v22 = vpop.f32.mrf.mxu1 }
  0xca   :  { %v673_v23 = vmul.f32 0.22947554, %v2816_v20 }
  0xcc   :  { %v705_v27 = vadd.f32 %v673_v23, %v127_v39 }
  0xce   :  { %737 = vst [vmem:[%s3703_s2 + $0xa0] sm:$0xff] %v705_v27  ;;  %v472_v28 = vpop.f32.mrf.mxu2 }
  0xcf   :  { %v561_v29 = vpop.f32.mrf.mxu3 }
  0xd0   :  { %v2827_v35 = vadd.f32 %v561_v29, %v472_v28  ;;  %v435_v32 = vpop.f32.mrf.mxu0 }
  0xd1   :  { %v524_v40 = vpop.f32.mrf.mxu1 }
  0xd2   :  { %v674_v41 = vmul.f32 0.22947554, %v2827_v35  ;;  %v2830_v46 = vadd.f32 %v524_v40, %v435_v32 }
  0xd4   :  { %v706_v49 = vadd.f32 %v674_v41, %v128_v34 }
  0xd6   :  { %738 = vst [vmem:[%s3703_s2 + $0xa8] sm:$0xff] %v706_v49  ;;  %v475_v50 = vpop.f32.mrf.mxu2 }
  0xd7   :  { %v564_v51 = vpop.f32.mrf.mxu3 }
  0xd8   :  { %v2838_v55 = vadd.f32 %v564_v51, %v475_v50  ;;  %v437_v56 = vpop.f32.mrf.mxu0 }
  0xd9   :  { %v526_v57 = vpop.f32.mrf.mxu1 }
  0xda   :  { %v675_v58 = vmul.f32 0.22947554, %v2838_v55 }
  0xdc   :  { %v707_v59 = vadd.f32 %v675_v58, %v129_v33 }
  0xde   :  { %739 = vst [vmem:[%s3703_s2 + $0xb0] sm:$0xff] %v707_v59  ;;  %v2844_v44 = vpop.f32.mrf.mxu2 }
  0xdf   :  { %v2846_v61 = vpop.f32.mrf.mxu3 }
  0xe0   :  { %v440_v62 = vpop.f32.mrf.mxu0 }
  0xe1   :  { %v529_v1 = vpop.f32.mrf.mxu1 }
  0xe2   :  { %v2848_v2 = vadd.f32 %v529_v1, %v440_v62 }
  0xe6   :  { %v480_v26 = vpop.f32.mrf.mxu2 }
  0xe7   :  { %v569_v3 = vpop.f32.mrf.mxu3 }
  0xe8   :  { %v2850_v45 = vadd.f32 %v569_v3, %v480_v26  ;;  %v442_v7 = vpop.f32.mrf.mxu0 }
  0xe9   :  { %v531_v8 = vpop.f32.mrf.mxu1 }
  0xee   :  { %v482_v9 = vpop.f32.mrf.mxu2 }
  0xef   :  { %v571_v10 = vpop.f32.mrf.mxu3 }
  0xf0   :  { %v445_v11 = vpop.f32.mrf.mxu0 }
  0xf1   :  { %v534_v38 = vpop.f32.mrf.mxu1 }
  0xf6   :  { %v485_v13 = vpop.f32.mrf.mxu2 }
  0xf7   :  { %v574_v14 = vpop.f32.mrf.mxu3 }
  0xf8   :  { %v447_v17 = vpop.f32.mrf.mxu0 }
  0xf9   :  { %v536_v18 = vpop.f32.mrf.mxu1 }
  0xfa   :  { %v2862_v25 = vadd.f32 %v536_v18, %v447_v17  ;;  %v2888_v17 = vadd.f32 %v574_v14, %v485_v13  ;;  %v3711_v13 = vpack.c.bf16 %v2805_v12, %v2794_v4  ;;  %v2325_v14 = vld [vmem:[%s3702_s0 + $0x4] sm:$0xf]  ;;  %v2047_v4 = vld [vmem:[%s3702_s0 + $0x10] sm:$0xf]  ;;  %v2328_v12 = vld [vmem:[%s3702_s0 + $0x14] sm:$0xf0] }
  0xfe   :  { %v487_v19 = vpop.f32.mrf.mxu2 }
  0xff   :  { %v576_v39 = vpop.f32.mrf.mxu3 }
 0x100   :  { %v450_v23 = vpop.f32.mrf.mxu0 }
 0x101   :  { %v539_v27 = vpop.f32.mrf.mxu1 }
 0x102   :  { %v2860_v0 = vadd.f32 %v539_v27, %v450_v23  ;;  %v2876_v27 = vadd.f32 %v531_v8, %v442_v7  ;;  %v2892_v8 = vadd.f32 %v571_v10, %v482_v9  ;;  %v2910_v10 = vadd.f32 %v2798_v6, %v2796_v5  ;;  %v2039_v5 = vld [vmem:[%s3702_s0] sm:$0xf]  ;;  %v2326_v6 = vld [vmem:[%s3702_s0 + $0x4] sm:$0xf0] }
 0x104   :  { %v817_v7 = vpack.c.bf16 %v2876_v27, %v2848_v2  ;;  %v825_v9 = vpack.c.bf16 %v2892_v8, %v2850_v45 }
 0x106   :  { %v490_v28 = vpop.f32.mrf.mxu2 }
 0x107   :  { %v579_v29 = vpop.f32.mrf.mxu3 }
 0x108   :  { %v452_v34 = vpop.f32.mrf.mxu0 }
 0x109   :  { %v541_v32 = vpop.f32.mrf.mxu1 }
 0x10a   :  { %v2856_v26 = vadd.f32 %v541_v32, %v452_v34  ;;  %v2878_v32 = vadd.f32 %v579_v29, %v490_v28  ;;  %v2048_v28 = vor.u32 %v2328_v12, %v2047_v4  ;;  %v2327_v29 = vld [vmem:[%s3702_s0 + $0x14] sm:$0xf]  ;;  %v2089_v4 = vld [vmem:[%s3702_s0 + $0x68] sm:$0xf0] }
 0x10e   :  { %v492_v40 = vpop.f32.mrf.mxu2 }
 0x10f   :  { %v581_v41 = vpop.f32.mrf.mxu3 }
 0x110   :  { %v455_v49 = vpop.f32.mrf.mxu0  ;;  %v2872_v34 = vadd.f32 %v581_v41, %v492_v40  ;;  %v2049_v40 = vld [vmem:[%s3702_s0 + $0x18] sm:$0xf0]  ;;  %v2330_v41 = vld [vmem:[%s3702_s0 + $0x24] sm:$0xf0] }
 0x111   :  { %v544_v50 = vpop.f32.mrf.mxu1 }
 0x112   :  { %v2852_v62 = vadd.f32 %v544_v50, %v455_v49  ;;  %v819_v49 = vpack.c.bf16 %v2856_v26, %v2860_v0  ;;  %v2870_v50 = vadd.f32 %v534_v38, %v445_v11  ;;  %v827_v11 = vpack.c.bf16 %v2872_v34, %v2878_v32 }
 0x113   :  { %v2886_v38 = vadd.f32 %v526_v57, %v437_v56  ;;  %v2904_v57 = vadd.f32 %v2846_v61, %v2844_v44  ;;  %v2918_v44 = vadd.f32 %v2776_v54, %v2774_v53  ;;  %v814_v61 = vpack.c.bf16 %v2910_v10, %v2786_v63 }
 0x114   :  { %v2040_v54 = vor.u32 %v2326_v6, %v2039_v5  ;;  %v2079_v5 = vld [vmem:[%s3702_s0 + $0x50] sm:$0xf]  ;;  %v2336_v6 = vld [vmem:[%s3702_s0 + $0x54] sm:$0xf0] }
 0x115   :  { %v816_v56 = vpack.c.bf16 %v2886_v38, %v2830_v46  ;;  %v813_v53 = vpack.c.bf16 %v2918_v44, %v2769_v48 }
 0x116   :  { %v495_v51 = vpop.f32.mrf.mxu2 }
 0x117   :  { %v584_v33 = vpop.f32.mrf.mxu3 }
 0x118   :  { %v457_v58 = vpop.f32.mrf.mxu0  ;;  %v2864_v24 = vadd.f32 %v584_v33, %v495_v51  ;;  %v2329_v33 = vld [vmem:[%s3702_s0 + $0x24] sm:$0xf] }
 0x119   :  { %v546_v59 = vpop.f32.mrf.mxu1 }
 0x11a   :  { %v2854_v1 = vadd.f32 %v546_v59, %v457_v58  ;;  %v2057_v58 = vld [vmem:[%s3702_s0 + $0x28] sm:$0xf0] }
 0x11b   :  { %v2060_v59 = vor.u32 %v2329_v33, %v2057_v58  ;;  %v2342_v33 = vld [vmem:[%s3702_s0 + $0x84] sm:$0xf0] }
 0x11c   :  { %v820_v3 = vpack.c.bf16 %v2854_v1, %v2852_v62 }
 0x11e   :  { %989 = vmatpush.bf16.msrb.mxu2 %v820_v3  ;;  %v497_v16 = vpop.f32.mrf.mxu2  ;;  %v2063_v3 = vld [vmem:[%s3702_s0 + $0x30] sm:$0xf] }
 0x11f   :  { %v586_v47 = vpop.f32.mrf.mxu3 }
 0x120   :  { %v2866_v31 = vadd.f32 %v586_v47, %v497_v16  ;;  %v818_v16 = vpack.c.bf16 %v2862_v25, %v2870_v50  ;;  %v2882_v47 = vadd.f32 %v576_v39, %v487_v19  ;;  %v2898_v19 = vadd.f32 %v2820_v22, %v2818_v21  ;;  %v2041_v39 = vld [vmem:[%s3702_s0 + $0x8] sm:$0xf0] }
 0x121   :  { %v824_v22 = vpack.c.bf16 %v2904_v57, %v2838_v55  ;;  %v3710_v55 = vpack.c.bf16 %v2827_v35, %v2816_v20  ;;  %v2044_v20 = vor.u32 %v2325_v14, %v2041_v39  ;;  %v3712_v35 = vpack.c.bf16 %v2783_v60, %v2772_v52  ;;  %v2055_v60 = vld [vmem:[%s3702_s0 + $0x20] sm:$0xf]  ;;  %v2338_v39 = vld [vmem:[%s3702_s0 + $0x64] sm:$0xf0] }
 0x122   :  { %990 = vmatpush.bf16.msrb.mxu2 %v819_v49  ;;  %v828_v23 = vpack.c.bf16 %v2866_v31, %v2864_v24  ;;  %v826_v18 = vpack.c.bf16 %v2882_v47, %v2888_v17  ;;  %v815_v21 = vpack.c.bf16 %v2898_v19, %v2808_v15  ;;  %v2052_v52 = vor.u32 %v2327_v29, %v2049_v40  ;;  %v2332_v49 = vld [vmem:[%s3702_s0 + $0x34] sm:$0xf0]  ;;  %v2087_v14 = vld [vmem:[%s3702_s0 + $0x60] sm:$0xf] }
 0x123   :  { %v2056_v51 = vor.u32 %v2330_v41, %v2055_v60  ;;  %v2340_v29 = vld [vmem:[%s3702_s0 + $0x74] sm:$0xf0]  ;;  %v2097_v60 = vld [vmem:[%s3702_s0 + $0x78] sm:$0xf0] }
 0x124   :  { %1078 = vmatpush.bf16.msrb.mxu3 %v828_v23  ;;  %v2064_v23 = vor.u32 %v2332_v49, %v2063_v3  ;;  %v2105_v3 = vld [vmem:[%s3702_s0 + $0x88] sm:$0xf0] }
 0x126   :  { %991 = vmatpush.bf16.msrb.mxu2 %v818_v16  ;;  %v2331_v16 = vld [vmem:[%s3702_s0 + $0x34] sm:$0xf] }
 0x128   :  { %1079 = vmatpush.bf16.msrb.mxu3 %v827_v11  ;;  %v2065_v11 = vld [vmem:[%s3702_s0 + $0x38] sm:$0xf0] }
 0x12a   :  { %992 = vmatpush.bf16.msrb.mxu2 %v817_v7  ;;  %v2068_v7 = vor.u32 %v2331_v16, %v2065_v11  ;;  %v107_v16 = vmul.f32 0.14478295, %v2556_v42  ;;  %v653_v11 = vmul.f32 0.22947554, %v2769_v48  ;;  %v2343_v42 = vld [vmem:[%s3702_s0 + $0x94] sm:$0xf] }
 0x12b   :  { %v2113_v48 = vld [vmem:[%s3702_s0 + $0x98] sm:$0xf0] }
 0x12c   :  { %1080 = vmatpush.bf16.msrb.mxu3 %v826_v18  ;;  %v2071_v18 = vld [vmem:[%s3702_s0 + $0x40] sm:$0xf] }
 0x12e   :  { %993 = vmatpush.bf16.msrb.mxu2 %v816_v56  ;;  %v2334_v56 = vld [vmem:[%s3702_s0 + $0x44] sm:$0xf0] }
 0x130   :  { %1081 = vmatpush.bf16.msrb.mxu3 %v825_v9  ;;  %v2072_v9 = vor.u32 %v2334_v56, %v2071_v18  ;;  %v2111_v18 = vld [vmem:[%s3702_s0 + $0x90] sm:$0xf]  ;;  %v2344_v56 = vld [vmem:[%s3702_s0 + $0x94] sm:$0xf0] }
 0x132   :  { %994 = vmatpush.bf16.msrb.mxu2 %v815_v21  ;;  %v2333_v21 = vld [vmem:[%s3702_s0 + $0x44] sm:$0xf] }
 0x134   :  { %1082 = vmatpush.bf16.msrb.mxu3 %v824_v22  ;;  %v2073_v22 = vld [vmem:[%s3702_s0 + $0x48] sm:$0xf0] }
 0x136   :  { %995 = vmatpush.bf16.msrb.mxu2 %v814_v61  ;;  %v2076_v61 = vor.u32 %v2333_v21, %v2073_v22  ;;  %v685_v22 = vadd.f32 %v653_v11, %v107_v16 }
 0x138   :  { %1083 = vmatpush.bf16.msrb.mxu3 %v3710_v55  ;;  %v2080_v55 = vor.u32 %v2336_v6, %v2079_v5  ;;  %v2112_v5 = vor.u32 %v2344_v56, %v2111_v18 }
 0x13a   :  { %996 = vmatpush.bf16.msrb.mxu2 %v813_v53  ;;  %v2335_v53 = vld [vmem:[%s3702_s0 + $0x54] sm:$0xf] }
 0x13c   :  { %1084 = vmatpush.bf16.msrb.mxu3 %v3711_v13 }
 0x13d   :  { %997 = vmatmul.bf16.vlgmr.msrb.gmra.mxu2 %v2040_v54  ;;  %v2081_v54 = vld [vmem:[%s3702_s0 + $0x58] sm:$0xf0] }
 0x13e   :  { %v2084_v13 = vor.u32 %v2335_v53, %v2081_v54  ;;  %v654_v53 = vmul.f32 0.22947554, %v2918_v44 }
 0x140   :  { %1085 = vmatpush.bf16.msrb.mxu3 %v3712_v35  ;;  %v2337_v35 = vld [vmem:[%s3702_s0 + $0x64] sm:$0xf] }
 0x141   :  { %v2092_v12 = vor.u32 %v2337_v35, %v2089_v4 }
 0x143   :  { %1086 = vmatmul.bf16.vlgmr.msrb.gmra.mxu3 %v2044_v20  ;;  %v2088_v20 = vor.u32 %v2338_v39, %v2087_v14  ;;  %v2116_v14 = vor.u32 %v2343_v42, %v2113_v48 }
 0x14d   :  { %1002 = vmatmul.bf16.gmra.mxu2 %v2048_v28  ;;  %v2095_v28 = vld [vmem:[%s3702_s0 + $0x70] sm:$0xf] }
 0x14e   :  { %v2096_v40 = vor.u32 %v2340_v29, %v2095_v28  ;;  %v109_v28 = vmul.f32 0.14478295, %v2532_v36  ;;  %v2119_v29 = vld [vmem:[%s3702_s0 + $0xa0] sm:$0xf]  ;;  %v2345_v36 = vld [vmem:[%s3702_s0 + $0xa4] sm:$0xf] }
 0x153   :  { %1091 = vmatmul.bf16.gmra.mxu3 %v2052_v52  ;;  %v2339_v52 = vld [vmem:[%s3702_s0 + $0x74] sm:$0xf] }
 0x154   :  { %v2100_v41 = vor.u32 %v2339_v52, %v2097_v60 }
 0x15d   :  { %1007 = vmatmul.bf16.gmra.mxu2 %v2056_v51  ;;  %v2103_v51 = vld [vmem:[%s3702_s0 + $0x80] sm:$0xf] }
 0x15e   :  { %v2104_v58 = vor.u32 %v2342_v33, %v2103_v51 }
 0x163   :  { %1096 = vmatmul.bf16.gmra.mxu3 %v2060_v59  ;;  %v2341_v59 = vld [vmem:[%s3702_s0 + $0x84] sm:$0xf] }
 0x164   :  { %v2108_v49 = vor.u32 %v2341_v59, %v2105_v3  ;;  %v110_v59 = vmul.f32 0.14478295, %v2537_v37  ;;  %v656_v3 = vmul.f32 0.22947554, %v2910_v10  ;;  %v657_v37 = vmul.f32 0.22947554, %v2808_v15 }
 0x165   :  { %v2129_v15 = vld [vmem:[%s3702_s0 + $0xb8] sm:$0xf0] }
 0x16d   :  { %1012 = vmatmul.bf16.gmra.mxu2 %v2064_v23 }
 0x173   :  { %1101 = vmatmul.bf16.gmra.mxu3 %v2068_v7 }
 0x17d   :  { %1017 = vmatmul.bf16.gmra.mxu2 %v2072_v9 }
 0x183   :  { %1106 = vmatmul.bf16.gmra.mxu3 %v2076_v61 }
 0x18d   :  { %1022 = vmatmul.bf16.gmra.mxu2 %v2080_v55  ;;  %v108_v55 = vmul.f32 0.14478295, %v2561_v43  ;;  %v655_v43 = vmul.f32 0.22947554, %v2786_v63  ;;  %v2121_v63 = vld [vmem:[%s3702_s0 + $0xa8] sm:$0xf0] }
 0x18e   :  { %v2124_v16 = vor.u32 %v2345_v36, %v2121_v63  ;;  %v659_v63 = vmul.f32 0.22947554, %v2830_v46  ;;  %v2349_v46 = vld [vmem:[%s3702_s0 + $0xc4] sm:$0xf] }
 0x193   :  { %1111 = vmatmul.bf16.gmra.mxu3 %v2084_v13 }
 0x19d   :  { %1027 = vmatmul.bf16.gmra.mxu2 %v2088_v20  ;;  %v686_v20 = vadd.f32 %v654_v53, %v108_v55 }
 0x1a3   :  { %1116 = vmatmul.bf16.gmra.mxu3 %v2092_v12 }
 0x1ad   :  { %1032 = vmatmul.bf16.gmra.mxu2 %v2096_v40  ;;  %v2346_v40 = vld [vmem:[%s3702_s0 + $0xa4] sm:$0xf0] }
 0x1ae   :  { %v2120_v33 = vor.u32 %v2346_v40, %v2119_v29 }
 0x1b3   :  { %1121 = vmatmul.bf16.gmra.mxu3 %v2100_v41  ;;  %v687_v41 = vadd.f32 %v655_v43, %v109_v28 }
 0x1bd   :  { %1037 = vmatmul.bf16.gmra.mxu2 %v2104_v58 }
 0x1c0   :  { %v998_v23 = vpop.f32.mrf.mxu2 }
 0x1c3   :  { %1126 = vmatmul.bf16.gmra.mxu3 %v2108_v49 }
 0x1c6   :  { %v1087_v7 = vpop.f32.mrf.mxu3 }
 0x1c7   :  { %v3049_v9 = vadd.f32 %v1087_v7, %v998_v23  ;;  %v688_v7 = vadd.f32 %v656_v3, %v110_v59  ;;  %v2135_v59 = vld [vmem:[%s3702_s0 + $0xc0] sm:$0xf]  ;;  %v2350_v3 = vld [vmem:[%s3702_s0 + $0xc4] sm:$0xf0] }
 0x1c8   :  { %v1000_v21 = vpop.f32.mrf.mxu2 }
 0x1c9   :  { %v1231_v61 = vmul.f32 0.2895659, %v3049_v9 }
 0x1cb   :  { %v3052_v6 = vadd.f32 %v1231_v61, %v685_v22  ;;  %v111_v22 = vmul.f32 0.14478295, %v2508_v30  ;;  %v2127_v61 = vld [vmem:[%s3702_s0 + $0xb0] sm:$0xf]  ;;  %v2347_v30 = vld [vmem:[%s3702_s0 + $0xb4] sm:$0xf] }
 0x1cd   :  { %1042 = vmatmul.bf16.gmra.mxu2 %v2112_v5  ;;  %v2348_v5 = vld [vmem:[%s3702_s0 + $0xb4] sm:$0xf0]  ;;  %v689_v55 = vadd.f32 %v657_v37, %v111_v22  ;;  %v2137_v37 = vld [vmem:[%s3702_s0 + $0xc8] sm:$0xf0] }
 0x1ce   :  { %v1089_v54 = vpop.f32.mrf.mxu3 }
 0x1cf   :  { %v3062_v13 = vadd.f32 %v1089_v54, %v1000_v21  ;;  %v2128_v54 = vor.u32 %v2348_v5, %v2127_v61  ;;  %v660_v5 = vmul.f32 0.22947554, %v2886_v38 }
 0x1d0   :  { %v1003_v39 = vpop.f32.mrf.mxu2 }
 0x1d1   :  { %v1232_v35 = vmul.f32 0.2895659, %v3062_v13  ;;  %v1391_v4 = vpack.c.bf16 %v3062_v13, %v3049_v9  ;;  %v2413_v13 = vld [vmem:[%s3701_s1 + $0xb8] sm:$0xff] }
 0x1d3   :  { %v3067_v12 = vadd.f32 %v1232_v35, %v686_v20  ;;  %1131 = vmatmul.bf16.gmra.mxu3 %v2116_v14  ;;  %v658_v35 = vmul.f32 0.22947554, %v2898_v19 }
 0x1d6   :  { %v1092_v44 = vpop.f32.mrf.mxu3 }
 0x1d7   :  { %v3077_v52 = vadd.f32 %v1092_v44, %v1003_v39  ;;  %v3713_v39 = vld [vmem:[#allocation5_spill] sm:$0xff]  ;;  %v2132_v44 = vor.u32 %v2347_v30, %v2129_v15 }
 0x1d8   :  { %v1005_v60 = vpop.f32.mrf.mxu2  ;;  %v112_v20 = vmul.f32 0.14478295, %v3713_v39 }
 0x1d9   :  { %v1233_v51 = vmul.f32 0.2895659, %v3077_v52 }
 0x1da   :  { %v690_v40 = vadd.f32 %v658_v35, %v112_v20  ;;  %v2405_v35 = vld [vmem:[%s3701_s1 + $0x40] sm:$0xff] }
 0x1db   :  { %v3080_v58 = vadd.f32 %v1233_v51, %v687_v41  ;;  %v115_v38 = vmul.f32 0.14478295, %v2405_v35  ;;  %v2354_v35 = vld [vmem:[%s3702_s0 + $0xe4] sm:$0xf0] }
 0x1dd   :  { %1047 = vmatmul.bf16.gmra.mxu2 %v2120_v33  ;;  %v3714_v33 = vld [vmem:[#allocation3_spill] sm:$0xff] }
 0x1de   :  { %v1094_v49 = vpop.f32.mrf.mxu3  ;;  %v113_v36 = vmul.f32 0.14478295, %v3714_v33 }
 0x1df   :  { %v3090_v23 = vadd.f32 %v1094_v49, %v1005_v60 }
 0x1e0   :  { %v1008_v11 = vpop.f32.mrf.mxu2 }
 0x1e1   :  { %v1234_v18 = vmul.f32 0.2895659, %v3090_v23  ;;  %v1392_v56 = vpack.c.bf16 %v3090_v23, %v3077_v52 }
 0x1e3   :  { %v3095_v21 = vadd.f32 %v1234_v18, %v688_v7  ;;  %1136 = vmatmul.bf16.gmra.mxu3 %v2124_v16  ;;  %v2136_v18 = vor.u32 %v2350_v3, %v2135_v59  ;;  %v2145_v3 = vld [vmem:[%s3702_s0 + $0xd8] sm:$0xf0] }
 0x1e6   :  { %v1097_v10 = vpop.f32.mrf.mxu3 }
 0x1e7   :  { %v3105_v42 = vadd.f32 %v1097_v10, %v1008_v11  ;;  %v691_v11 = vadd.f32 %v659_v63, %v113_v36  ;;  %v3715_v10 = vld [vmem:[#allocation4_spill] sm:$0xff] }
 0x1e8   :  { %v1010_v48 = vpop.f32.mrf.mxu2  ;;  %v114_v61 = vmul.f32 0.14478295, %v3715_v10 }
 0x1e9   :  { %v1235_v53 = vmul.f32 0.2895659, %v3105_v42 }
 0x1ea   :  { %v692_v30 = vadd.f32 %v660_v5, %v114_v61 }
 0x1eb   :  { %v3108_v14 = vadd.f32 %v1235_v53, %v689_v55  ;;  %v2140_v53 = vor.u32 %v2349_v46, %v2137_v37 }
 0x1ed   :  { %1052 = vmatmul.bf16.gmra.mxu2 %v2128_v54 }
 0x1ee   :  { %v1099_v28 = vpop.f32.mrf.mxu3 }
 0x1ef   :  { %v3118_v43 = vadd.f32 %v1099_v28, %v1010_v48  ;;  %v661_v28 = vmul.f32 0.22947554, %v2848_v2  ;;  %v2351_v2 = vld [vmem:[%s3702_s0 + $0xd4] sm:$0xf] }
 0x1f0   :  { %v1013_v29 = vpop.f32.mrf.mxu2  ;;  %v2148_v37 = vor.u32 %v2351_v2, %v2145_v3  ;;  %v664_v2 = vmul.f32 0.22947554, %v2862_v25  ;;  %v2159_v25 = vld [vmem:[%s3702_s0 + $0xf0] sm:$0xf] }
 0x1f1   :  { %v1236_v60 = vmul.f32 0.2895659, %v3118_v43  ;;  %v1393_v41 = vpack.c.bf16 %v3118_v43, %v3105_v42  ;;  %v693_v36 = vadd.f32 %v661_v28, %v115_v38 }
 0x1f3   :  { %v3123_v51 = vadd.f32 %v1236_v60, %v690_v40  ;;  %1141 = vmatmul.bf16.gmra.mxu3 %v2132_v44  ;;  %v2352_v40 = vld [vmem:[%s3702_s0 + $0xd4] sm:$0xf0] }
 0x1f6   :  { %v1102_v19 = vpop.f32.mrf.mxu3 }
 0x1f7   :  { %v3133_v49 = vadd.f32 %v1102_v19, %v1013_v29  ;;  %v2143_v29 = vld [vmem:[%s3702_s0 + $0xd0] sm:$0xf] }
 0x1f8   :  { %v1015_v16 = vpop.f32.mrf.mxu2  ;;  %v2144_v19 = vor.u32 %v2352_v40, %v2143_v29 }
 0x1f9   :  { %v1237_v7 = vmul.f32 0.2895659, %v3133_v49 }
 0x1fb   :  { %v3136_v22 = vadd.f32 %v1237_v7, %v691_v11  ;;  %v662_v7 = vmul.f32 0.22947554, %v2876_v27 }
 0x1fd   :  { %1057 = vmatmul.bf16.gmra.mxu2 %v2136_v18 }
 0x1fe   :  { %v1104_v48 = vpop.f32.mrf.mxu3 }
 0x1ff   :  { %v3146_v55 = vadd.f32 %v1104_v48, %v1015_v16  ;;  %v2406_v16 = vld [vmem:[%s3701_s1 + $0x48] sm:$0xff] }
 0x200   :  { %v1018_v54 = vpop.f32.mrf.mxu2  ;;  %v116_v11 = vmul.f32 0.14478295, %v2406_v16 }
 0x201   :  { %v1238_v15 = vmul.f32 0.2895659, %v3146_v55  ;;  %v1394_v39 = vpack.c.bf16 %v3146_v55, %v3133_v49 }
 0x202   :  { %v694_v61 = vadd.f32 %v662_v7, %v116_v11 }
 0x203   :  { %v3151_v20 = vadd.f32 %v1238_v15, %v692_v30  ;;  %1146 = vmatmul.bf16.gmra.mxu3 %v2140_v53  ;;  %v2407_v53 = vld [vmem:[%s3701_s1 + $0x50] sm:$0xff]  ;;  %v663_v30 = vmul.f32 0.22947554, %v2870_v50  ;;  %v2151_v15 = vld [vmem:[%s3702_s0 + $0xe0] sm:$0xf] }
 0x204   :  { %v2152_v40 = vor.u32 %v2354_v35, %v2151_v15  ;;  %v2353_v50 = vld [vmem:[%s3702_s0 + $0xe4] sm:$0xf] }
 0x206   :  { %v1107_v44 = vpop.f32.mrf.mxu3 }
 0x207   :  { %v3163_v60 = vadd.f32 %v1107_v44, %v1018_v54  ;;  %v117_v54 = vmul.f32 0.14478295, %v2407_v53  ;;  %v665_v53 = vmul.f32 0.22947554, %v2860_v0  ;;  %v2355_v0 = vld [vmem:[%s3702_s0 + $0xf4] sm:$0xf] }
 0x208   :  { %v1020_v33 = vpop.f32.mrf.mxu2 }
 0x209   :  { %v1239_v63 = vmul.f32 0.2895659, %v3163_v60  ;;  %v695_v44 = vadd.f32 %v663_v30, %v117_v54  ;;  %v2356_v30 = vld [vmem:[%s3702_s0 + $0xf4] sm:$0xf0] }
 0x20b   :  { %v3166_v59 = vadd.f32 %v1239_v63, %v693_v36  ;;  %v2153_v36 = vld [vmem:[%s3702_s0 + $0xe8] sm:$0xf0]  ;;  %v2408_v63 = vld [vmem:[%s3701_s1 + $0x58] sm:$0xff] }
 0x20c   :  { %v2156_v11 = vor.u32 %v2353_v50, %v2153_v36  ;;  %v2410_v50 = vld [vmem:[%s3701_s1 + $0x68] sm:$0xff] }
 0x20d   :  { %1062 = vmatmul.bf16.gmra.mxu2 %v2144_v19  ;;  %v118_v19 = vmul.f32 0.14478295, %v2408_v63  ;;  %v120_v36 = vmul.f32 0.14478295, %v2410_v50  ;;  %v666_v63 = vmul.f32 0.22947554, %v2856_v26 }
 0x20e   :  { %v1109_v18 = vpop.f32.mrf.mxu3 }
 0x20f   :  { %v3178_v46 = vadd.f32 %v1109_v18, %v1020_v33  ;;  %v696_v18 = vadd.f32 %v664_v2, %v118_v19 }
 0x210   :  { %v1023_v10 = vpop.f32.mrf.mxu2 }
 0x211   :  { %v1240_v5 = vmul.f32 0.2895659, %v3178_v46 }
 0x213   :  { %v3181_v48 = vadd.f32 %v1240_v5, %v694_v61  ;;  %1151 = vmatmul.bf16.gmra.mxu3 %v2148_v37  ;;  %v2409_v61 = vld [vmem:[%s3701_s1 + $0x60] sm:$0xff] }
 0x214   :  { %v119_v5 = vmul.f32 0.14478295, %v2409_v61  ;;  %v2411_v61 = vld [vmem:[%s3701_s1 + $0x70] sm:$0xff] }
 0x216   :  { %v1112_v27 = vpop.f32.mrf.mxu3  ;;  %v697_v35 = vadd.f32 %v665_v53, %v119_v5  ;;  %v121_v5 = vmul.f32 0.14478295, %v2411_v61  ;;  %v667_v53 = vmul.f32 0.22947554, %v2852_v62 }
 0x217   :  { %v3193_v38 = vadd.f32 %v1112_v27, %v1023_v10 }
 0x218   :  { %v1025_v28 = vpop.f32.mrf.mxu2 }
 0x219   :  { %v1241_v29 = vmul.f32 0.2895659, %v3193_v38 }
 0x21b   :  { %v3196_v33 = vadd.f32 %v1241_v29, %v695_v44  ;;  %v2160_v44 = vor.u32 %v2356_v30, %v2159_v25  ;;  %v699_v30 = vadd.f32 %v667_v53, %v121_v5 }
 0x21d   :  { %1067 = vmatmul.bf16.gmra.mxu2 %v2152_v40  ;;  %v2161_v40 = vld [vmem:[%s3702_s0 + $0xf8] sm:$0xf0] }
 0x21e   :  { %v1114_v3 = vpop.f32.mrf.mxu3 }
 0x21f   :  { %v1115_v16 = vadd.f32 %v1114_v3, %v1025_v28  ;;  %v2164_v3 = vor.u32 %v2355_v0, %v2161_v40  ;;  %v668_v0 = vmul.f32 0.22947554, %v2854_v1  ;;  %v1395_v1 = vpack.c.bf16 %v3178_v46, %v3163_v60 }
 0x220   :  { %v1028_v7 = vpop.f32.mrf.mxu2 }
 0x221   :  { %v1242_v37 = vmul.f32 0.2895659, %v1115_v16  ;;  %v1396_v5 = vpack.c.bf16 %v1115_v16, %v3193_v38 }
 0x223   :  { %v3208_v10 = vadd.f32 %v1242_v37, %v696_v18  ;;  %1156 = vmatmul.bf16.gmra.mxu3 %v2156_v11 }
 0x226   :  { %v1117_v54 = vpop.f32.mrf.mxu3 }
 0x227   :  { %v1118_v27 = vadd.f32 %v1117_v54, %v1028_v7  ;;  %v698_v7 = vadd.f32 %v666_v63, %v120_v36 }
 0x228   :  { %v1030_v15 = vpop.f32.mrf.mxu2 }
 0x229   :  { %v1243_v28 = vmul.f32 0.2895659, %v1118_v27 }
 0x22b   :  { %v3220_v29 = vadd.f32 %v1243_v28, %v697_v35  ;;  %v2412_v28 = vld [vmem:[%s3701_s1 + $0x78] sm:$0xff] }
 0x22d   :  { %1072 = vmatmul.bf16.gmra.mxu2 %v2160_v44  ;;  %v122_v44 = vmul.f32 0.14478295, %v2412_v28 }
 0x22e   :  { %v1119_v19 = vpop.f32.mrf.mxu3 }
 0x22f   :  { %v1120_v2 = vadd.f32 %v1119_v19, %v1030_v15  ;;  %v700_v63 = vadd.f32 %v668_v0, %v122_v44 }
 0x230   :  { %v1033_v11 = vpop.f32.mrf.mxu2 }
 0x231   :  { %v1244_v18 = vmul.f32 0.2895659, %v1120_v2 }
 0x233   :  { %v3232_v37 = vadd.f32 %v1244_v18, %v698_v7  ;;  %1161 = vmatmul.bf16.gmra.mxu3 %v2164_v3 }
 0x236   :  { %v1122_v54 = vpop.f32.mrf.mxu3 }
 0x237   :  { %v1123_v25 = vadd.f32 %v1122_v54, %v1033_v11  ;;  %v1397_v11 = vpack.c.bf16 %v1120_v2, %v1118_v27 }
 0x238   :  { %v1035_v26 = vpop.f32.mrf.mxu2 }
 0x239   :  { %v1245_v35 = vmul.f32 0.2895659, %v1123_v25 }
 0x23b   :  { %v3238_v15 = vadd.f32 %v1245_v35, %v699_v30  ;;  %v676_v35 = vmul.f32 0.22947554, %v2904_v57 }
 0x23e   :  { %v1124_v40 = vpop.f32.mrf.mxu3 }
 0x23f   :  { %v1125_v50 = vadd.f32 %v1124_v40, %v1035_v26 }
 0x240   :  { %v1038_v36 = vpop.f32.mrf.mxu2 }
 0x241   :  { %v1246_v19 = vmul.f32 0.2895659, %v1125_v50  ;;  %v1398_v62 = vpack.c.bf16 %v1125_v50, %v1123_v25 }
 0x243   :  { %v3244_v3 = vadd.f32 %v1246_v19, %v700_v63  ;;  %1567 = vmatpush.bf16.msrb.mxu0 %v1398_v62  ;;  %v2414_v19 = vld [vmem:[%s3701_s1 + $0xc0] sm:$0xff] }
 0x244   :  { %v131_v62 = vmul.f32 0.14478295, %v2414_v19  ;;  %v680_v19 = vmul.f32 0.22947554, %v2882_v47 }
 0x246   :  { %v1127_v7 = vpop.f32.mrf.mxu3 }
 0x247   :  { %v3246_v18 = vadd.f32 %v1127_v7, %v1038_v36  ;;  %1568 = vmatpush.bf16.msrb.mxu0 %v1397_v11  ;;  %v677_v11 = vmul.f32 0.22947554, %v2850_v45 }
 0x248   :  { %v1040_v61 = vpop.f32.mrf.mxu2 }
 0x24b   :  { %1569 = vmatpush.bf16.msrb.mxu0 %v1396_v5  ;;  %v709_v5 = vadd.f32 %v677_v11, %v131_v62 }
 0x24e   :  { %v1129_v53 = vpop.f32.mrf.mxu3 }
 0x24f   :  { %v3251_v54 = vadd.f32 %v1129_v53, %v1040_v61  ;;  %1570 = vmatpush.bf16.msrb.mxu0 %v1395_v1 }
 0x250   :  { %v1043_v25 = vpop.f32.mrf.mxu2 }
 0x251   :  { %v1399_v26 = vpack.c.bf16 %v3251_v54, %v3246_v18 }
 0x253   :  { %1571 = vmatpush.bf16.msrb.mxu0 %v1394_v39 }
 0x256   :  { %v1132_v27 = vpop.f32.mrf.mxu3 }
 0x257   :  { %v3258_v2 = vadd.f32 %v1132_v27, %v1043_v25  ;;  %1572 = vmatpush.bf16.msrb.mxu0 %v1393_v41  ;;  %v2415_v25 = vld [vmem:[%s3701_s1 + $0xc8] sm:$0xff] }
 0x258   :  { %v1045_v60 = vpop.f32.mrf.mxu2  ;;  %v132_v27 = vmul.f32 0.14478295, %v2415_v25 }
 0x25b   :  { %1573 = vmatpush.bf16.msrb.mxu0 %v1392_v56 }
 0x25e   :  { %v1134_v46 = vpop.f32.mrf.mxu3 }
 0x25f   :  { %v3266_v38 = vadd.f32 %v1134_v46, %v1045_v60  ;;  %1574 = vmatpush.bf16.msrb.mxu0 %v1391_v4  ;;  %v130_v4 = vmul.f32 0.14478295, %v2413_v13  ;;  %v678_v60 = vmul.f32 0.22947554, %v2892_v8 }
 0x260   :  { %v1048_v49 = vpop.f32.mrf.mxu2 }
 0x261   :  { %v1400_v55 = vpack.c.bf16 %v3266_v38, %v3258_v2  ;;  %v708_v40 = vadd.f32 %v676_v35, %v130_v4 }
 0x266   :  { %v1137_v39 = vpop.f32.mrf.mxu3 }
 0x267   :  { %v3273_v16 = vadd.f32 %v1137_v39, %v1048_v49  ;;  %v710_v39 = vadd.f32 %v678_v60, %v132_v27  ;;  %v681_v27 = vmul.f32 0.22947554, %v2878_v32 }
 0x268   :  { %v1050_v42 = vpop.f32.mrf.mxu2 }
 0x26e   :  { %v1139_v43 = vpop.f32.mrf.mxu3 }
 0x26f   :  { %v3275_v41 = vadd.f32 %v1139_v43, %v1050_v42 }
 0x270   :  { %v1053_v52 = vpop.f32.mrf.mxu2 }
 0x271   :  { %v1401_v23 = vpack.c.bf16 %v3275_v41, %v3273_v16 }
 0x276   :  { %v1142_v56 = vpop.f32.mrf.mxu3 }
 0x277   :  { %v3279_v30 = vadd.f32 %v1142_v56, %v1053_v52  ;;  %v2416_v52 = vld [vmem:[%s3701_s1 + $0xd0] sm:$0xff] }
 0x278   :  { %v1055_v9 = vpop.f32.mrf.mxu2  ;;  %v133_v56 = vmul.f32 0.14478295, %v2416_v52  ;;  %v2419_v52 = vld [vmem:[%s3701_s1 + $0xe8] sm:$0xff] }
 0x27e   :  { %v1144_v28 = vpop.f32.mrf.mxu3 }
 0x27f   :  { %v3285_v44 = vadd.f32 %v1144_v28, %v1055_v9  ;;  %v679_v9 = vmul.f32 0.22947554, %v2888_v17 }
 0x280   :  { %v1058_v0 = vpop.f32.mrf.mxu2 }
 0x281   :  { %v1254_v50 = vmul.f32 0.2895659, %v3285_v44  ;;  %v1402_v36 = vpack.c.bf16 %v3285_v44, %v3279_v30  ;;  %v711_v8 = vadd.f32 %v679_v9, %v133_v56  ;;  %v136_v56 = vmul.f32 0.14478295, %v2419_v52  ;;  %v2357_v44 = vld [vmem:[%s3702_s0 + $0x4] sm:$0xf] }
 0x282   :  { %v682_v9 = vmul.f32 0.22947554, %v2872_v34  ;;  %v2167_v34 = vld [vmem:[%s3702_s0] sm:$0xf] }
 0x283   :  { %v3290_v63 = vadd.f32 %v1254_v50, %v708_v40  ;;  %v2417_v40 = vld [vmem:[%s3701_s1 + $0xd8] sm:$0xff] }
 0x284   :  { %v134_v50 = vmul.f32 0.14478295, %v2417_v40 }
 0x286   :  { %v1147_v57 = vpop.f32.mrf.mxu3 }
 0x287   :  { %v3296_v7 = vadd.f32 %v1147_v57, %v1058_v0 }
 0x288   :  { %v1060_v61 = vpop.f32.mrf.mxu2 }
 0x289   :  { %v1255_v1 = vmul.f32 0.2895659, %v3296_v7 }
 0x28b   :  { %v3299_v53 = vadd.f32 %v1255_v1, %v709_v5  ;;  %v2418_v1 = vld [vmem:[%s3701_s1 + $0xe0] sm:$0xff] }
 0x28c   :  { %v135_v25 = vmul.f32 0.14478295, %v2418_v1 }
 0x28e   :  { %v1149_v46 = vpop.f32.mrf.mxu3 }
 0x28f   :  { %v3305_v49 = vadd.f32 %v1149_v46, %v1060_v61  ;;  %v712_v61 = vadd.f32 %v680_v19, %v134_v50  ;;  %v2420_v50 = vld [vmem:[%s3701_s1 + $0xf0] sm:$0xff] }
 0x290   :  { %v1063_v45 = vpop.f32.mrf.mxu2  ;;  %v137_v19 = vmul.f32 0.14478295, %v2420_v50  ;;  %v2360_v50 = vld [vmem:[%s3702_s0 + $0x14] sm:$0xf0] }
 0x291   :  { %v1256_v42 = vmul.f32 0.2895659, %v3305_v49 }
 0x293   :  { %v3308_v43 = vadd.f32 %v1256_v42, %v710_v39 }
 0x296   :  { %v1152_v13 = vpop.f32.mrf.mxu3 }
 0x297   :  { %v1153_v4 = vadd.f32 %v1152_v13, %v1063_v45  ;;  %v713_v45 = vadd.f32 %v681_v27, %v135_v25 }
 0x298   :  { %v1065_v35 = vpop.f32.mrf.mxu2 }
 0x299   :  { %v1257_v28 = vmul.f32 0.2895659, %v1153_v4 }
 0x29b   :  { %v3314_v0 = vadd.f32 %v1257_v28, %v711_v8  ;;  %v714_v8 = vadd.f32 %v682_v9, %v136_v56 }
 0x29e   :  { %v1154_v62 = vpop.f32.mrf.mxu3 }
 0x29f   :  { %v1155_v11 = vadd.f32 %v1154_v62, %v1065_v35  ;;  %v683_v62 = vmul.f32 0.22947554, %v2864_v24 }
 0x2a0   :  { %v1068_v57 = vpop.f32.mrf.mxu2 }
 0x2a1   :  { %v1258_v5 = vmul.f32 0.2895659, %v1155_v11  ;;  %v715_v25 = vadd.f32 %v683_v62, %v137_v19 }
 0x2a3   :  { %v3320_v17 = vadd.f32 %v1258_v5, %v712_v61  ;;  %v2358_v5 = vld [vmem:[%s3702_s0 + $0x4] sm:$0xf0] }
 0x2a4   :  { %v2168_v1 = vor.u32 %v2358_v5, %v2167_v34  ;;  %v2199_v34 = vld [vmem:[%s3702_s0 + $0x40] sm:$0xf]  ;;  %v2366_v5 = vld [vmem:[%s3702_s0 + $0x44] sm:$0xf0] }
 0x2a6   :  { %v1157_v60 = vpop.f32.mrf.mxu3  ;;  %1575 = vmatmul.bf16.vlgmr.msrb.gmra.mxu0 %v2168_v1  ;;  %v2200_v1 = vor.u32 %v2366_v5, %v2199_v34  ;;  %v2239_v5 = vld [vmem:[%s3702_s0 + $0x90] sm:$0xf] }
 0x2a7   :  { %v1158_v46 = vadd.f32 %v1157_v60, %v1068_v57  ;;  %v106_v60 = vld [vmem:[%s3701_s1 + $0xf8] sm:$0xff] }
 0x2a8   :  { %v1070_v42 = vpop.f32.mrf.mxu2  ;;  %v138_v24 = vmul.f32 0.14478295, %v106_v60 }
 0x2a9   :  { %v1259_v39 = vmul.f32 0.2895659, %v1158_v46 }
 0x2ab   :  { %v3326_v47 = vadd.f32 %v1259_v39, %v713_v45  ;;  %v684_v39 = vmul.f32 0.22947554, %v2866_v31  ;;  %v1404_v31 = vpack.c.bf16 %v1155_v11, %v1153_v4  ;;  %v2359_v4 = vld [vmem:[%s3702_s0 + $0x14] sm:$0xf]  ;;  %v2177_v11 = vld [vmem:[%s3702_s0 + $0x18] sm:$0xf0] }
 0x2ad   :  { %v716_v9 = vadd.f32 %v684_v39, %v138_v24  ;;  %v2207_v24 = vld [vmem:[%s3702_s0 + $0x50] sm:$0xf]  ;;  %v2368_v39 = vld [vmem:[%s3702_s0 + $0x54] sm:$0xf0] }
 0x2ae   :  { %v1159_v13 = vpop.f32.mrf.mxu3 }
 0x2af   :  { %v1160_v35 = vadd.f32 %v1159_v13, %v1070_v42 }
 0x2b0   :  { %v1073_v32 = vpop.f32.mrf.mxu2 }
 0x2b1   :  { %v1260_v28 = vmul.f32 0.2895659, %v1160_v35  ;;  %v1405_v19 = vpack.c.bf16 %v1160_v35, %v1158_v46  ;;  %v2362_v46 = vld [vmem:[%s3702_s0 + $0x24] sm:$0xf0] }
 0x2b3   :  { %v3332_v40 = vadd.f32 %v1260_v28, %v714_v8 }
 0x2b6   :  { %v1162_v57 = vpop.f32.mrf.mxu3 }
 0x2b7   :  { %v1163_v61 = vadd.f32 %v1162_v57, %v1073_v32  ;;  %v2175_v32 = vld [vmem:[%s3702_s0 + $0x10] sm:$0xf]  ;;  %v1403_v57 = vpack.c.bf16 %v3305_v49, %v3296_v7 }
 0x2b8   :  { %v1075_v42 = vpop.f32.mrf.mxu2  ;;  %v2176_v62 = vor.u32 %v2360_v50, %v2175_v32  ;;  %v2365_v50 = vld [vmem:[%s3702_s0 + $0x44] sm:$0xf] }
 0x2b9   :  { %v1261_v27 = vmul.f32 0.2895659, %v1163_v61 }
 0x2ba   :  { %1580 = vmatmul.bf16.gmra.mxu0 %v2176_v62 }
 0x2bb   :  { %v3347_v45 = vadd.f32 %v1261_v27, %v715_v25  ;;  %v2361_v25 = vld [vmem:[%s3702_s0 + $0x24] sm:$0xf]  ;;  %v2185_v27 = vld [vmem:[%s3702_s0 + $0x28] sm:$0xf0] }
 0x2bc   :  { %v2188_v60 = vor.u32 %v2361_v25, %v2185_v27  ;;  %v2371_v27 = vld [vmem:[%s3702_s0 + $0x74] sm:$0xf] }
 0x2be   :  { %v1164_v52 = vpop.f32.mrf.mxu3 }
 0x2bf   :  { %v1165_v56 = vadd.f32 %v1164_v52, %v1075_v42  ;;  %v2208_v42 = vor.u32 %v2368_v39, %v2207_v24  ;;  %v2363_v52 = vld [vmem:[%s3702_s0 + $0x34] sm:$0xf] }
 0x2c1   :  { %v1262_v13 = vmul.f32 0.2895659, %v1165_v56  ;;  %v1406_v8 = vpack.c.bf16 %v1165_v56, %v1163_v61  ;;  %v2183_v61 = vld [vmem:[%s3702_s0 + $0x20] sm:$0xf]  ;;  %v2193_v56 = vld [vmem:[%s3702_s0 + $0x38] sm:$0xf0] }
 0x2c2   :  { %v2184_v35 = vor.u32 %v2362_v46, %v2183_v61  ;;  %v2367_v46 = vld [vmem:[%s3702_s0 + $0x54] sm:$0xf] }
 0x2c3   :  { %v3350_v28 = vadd.f32 %v1262_v13, %v716_v9  ;;  %1656 = vmatpush.bf16.msrb.mxu1 %v1406_v8  ;;  %v2196_v9 = vor.u32 %v2363_v52, %v2193_v56  ;;  %v2215_v13 = vld [vmem:[%s3702_s0 + $0x60] sm:$0xf]  ;;  %v2370_v8 = vld [vmem:[%s3702_s0 + $0x64] sm:$0xf0] }
 0x2c4   :  { %v2216_v32 = vor.u32 %v2370_v8, %v2215_v13  ;;  %v2247_v52 = vld [vmem:[%s3702_s0 + $0xa0] sm:$0xf]  ;;  %v2378_v56 = vld [vmem:[%s3702_s0 + $0xa4] sm:$0xf0]  ;;  %v2373_v13 = vld [vmem:[%s3702_s0 + $0x84] sm:$0xf] }
 0x2c5   :  { %v2233_v8 = vld [vmem:[%s3702_s0 + $0x88] sm:$0xf0] }
 0x2c7   :  { %1657 = vmatpush.bf16.msrb.mxu1 %v1405_v19  ;;  %v2201_v19 = vld [vmem:[%s3702_s0 + $0x48] sm:$0xf0] }
 0x2c8   :  { %v2204_v62 = vor.u32 %v2365_v50, %v2201_v19 }
 0x2ca   :  { %1585 = vmatmul.bf16.gmra.mxu0 %v2184_v35  ;;  %v2209_v35 = vld [vmem:[%s3702_s0 + $0x58] sm:$0xf0] }
 0x2cb   :  { %1658 = vmatpush.bf16.msrb.mxu1 %v1404_v31  ;;  %v2223_v31 = vld [vmem:[%s3702_s0 + $0x70] sm:$0xf] }
 0x2cf   :  { %1659 = vmatpush.bf16.msrb.mxu1 %v1403_v57  ;;  %v2372_v57 = vld [vmem:[%s3702_s0 + $0x74] sm:$0xf0] }
 0x2d0   :  { %v2224_v61 = vor.u32 %v2372_v57, %v2223_v31 }
 0x2d3   :  { %1660 = vmatpush.bf16.msrb.mxu1 %v1402_v36  ;;  %v2169_v36 = vld [vmem:[%s3702_s0 + $0x8] sm:$0xf0] }
 0x2d4   :  { %v2172_v7 = vor.u32 %v2357_v44, %v2169_v36  ;;  %v2212_v44 = vor.u32 %v2367_v46, %v2209_v35  ;;  %v2255_v35 = vld [vmem:[%s3702_s0 + $0xb0] sm:$0xf] }
 0x2d7   :  { %1661 = vmatpush.bf16.msrb.mxu1 %v1401_v23  ;;  %v2191_v23 = vld [vmem:[%s3702_s0 + $0x30] sm:$0xf] }
 0x2db   :  { %1662 = vmatpush.bf16.msrb.mxu1 %v1400_v55  ;;  %v2364_v55 = vld [vmem:[%s3702_s0 + $0x34] sm:$0xf0] }
 0x2dc   :  { %v2192_v49 = vor.u32 %v2364_v55, %v2191_v23  ;;  %v2374_v23 = vld [vmem:[%s3702_s0 + $0x84] sm:$0xf0] }
 0x2de   :  { %1590 = vmatmul.bf16.gmra.mxu0 %v2192_v49  ;;  %v2369_v49 = vld [vmem:[%s3702_s0 + $0x64] sm:$0xf] }
 0x2df   :  { %1663 = vmatpush.bf16.msrb.mxu1 %v1399_v26  ;;  %v2180_v26 = vor.u32 %v2359_v4, %v2177_v11  ;;  %v2217_v4 = vld [vmem:[%s3702_s0 + $0x68] sm:$0xf0] }
 0x2e0   :  { %v2220_v11 = vor.u32 %v2369_v49, %v2217_v4 }
 0x2e2   :  { %1664 = vmatmul.bf16.vlgmr.msrb.gmra.mxu1 %v2172_v7  ;;  %v2231_v7 = vld [vmem:[%s3702_s0 + $0x80] sm:$0xf] }
 0x2e3   :  { %v2232_v55 = vor.u32 %v2374_v23, %v2231_v7 }
 0x2ee   :  { %1595 = vmatmul.bf16.gmra.mxu0 %v2200_v1  ;;  %v2376_v1 = vld [vmem:[%s3702_s0 + $0x94] sm:$0xf0] }
 0x2ef   :  { %v2240_v25 = vor.u32 %v2376_v1, %v2239_v5 }
 0x2f2   :  { %1669 = vmatmul.bf16.gmra.mxu1 %v2180_v26 }
 0x2fe   :  { %1600 = vmatmul.bf16.gmra.mxu0 %v2208_v42 }
 0x302   :  { %1674 = vmatmul.bf16.gmra.mxu1 %v2188_v60  ;;  %v2225_v60 = vld [vmem:[%s3702_s0 + $0x78] sm:$0xf0] }
 0x303   :  { %v2228_v24 = vor.u32 %v2371_v27, %v2225_v60 }
 0x30e   :  { %1605 = vmatmul.bf16.gmra.mxu0 %v2216_v32  ;;  %v2236_v32 = vor.u32 %v2373_v13, %v2233_v8 }
 0x312   :  { %1679 = vmatmul.bf16.gmra.mxu1 %v2196_v9  ;;  %v2248_v9 = vor.u32 %v2378_v56, %v2247_v52 }
 0x31e   :  { %1610 = vmatmul.bf16.gmra.mxu0 %v2224_v61 }
 0x322   :  { %1684 = vmatmul.bf16.gmra.mxu1 %v2204_v62 }
 0x323   :  { %v1576_v36 = vpop.f32.mrf.mxu0 }
 0x32b   :  { %v1578_v26 = vpop.f32.mrf.mxu0 }
 0x32e   :  { %1615 = vmatmul.bf16.gmra.mxu0 %v2232_v55  ;;  %v2241_v55 = vld [vmem:[%s3702_s0 + $0x98] sm:$0xf0] }
 0x332   :  { %1689 = vmatmul.bf16.gmra.mxu1 %v2212_v44  ;;  %v2380_v44 = vld [vmem:[%s3702_s0 + $0xb4] sm:$0xf0] }
 0x337   :  { %v1581_v34 = vpop.f32.mrf.mxu0 }
 0x33e   :  { %1620 = vmatmul.bf16.gmra.mxu0 %v2240_v25 }
 0x33f   :  { %v1583_v39 = vpop.f32.mrf.mxu0 }
 0x342   :  { %1694 = vmatmul.bf16.gmra.mxu1 %v2220_v11 }
 0x347   :  { %v1586_v42 = vpop.f32.mrf.mxu0 }
 0x34e   :  { %1625 = vmatmul.bf16.gmra.mxu0 %v2248_v9  ;;  %v2249_v9 = vld [vmem:[%s3702_s0 + $0xa8] sm:$0xf0] }
 0x34f   :  { %v1588_v19 = vpop.f32.mrf.mxu0 }
 0x352   :  { %1699 = vmatmul.bf16.gmra.mxu1 %v2228_v24  ;;  %v2382_v24 = vld [vmem:[%s3702_s0 + $0xc4] sm:$0xf0] }
 0x35b   :  { %v1591_v46 = vpop.f32.mrf.mxu0 }
 0x35f   :  { %v1665_v50 = vpop.f32.mrf.mxu1 }
 0x360   :  { %v1666_v62 = vadd.f32 %v1665_v50, %v1576_v36  ;;  %v2256_v36 = vor.u32 %v2380_v44, %v2255_v35  ;;  %v2384_v35 = vld [vmem:[%s3702_s0 + $0xd4] sm:$0xf0] }
 0x362   :  { %v1809_v31 = vmul.f32 0.3361756, %v1666_v62  ;;  %1704 = vmatmul.bf16.gmra.mxu1 %v2236_v32  ;;  %1630 = vmatmul.bf16.gmra.mxu0 %v2256_v36  ;;  %v2257_v36 = vld [vmem:[%s3702_s0 + $0xb8] sm:$0xf0] }
 0x364   :  { %v1841_v57 = vadd.f32 %v1809_v31, %v3052_v6  ;;  %v2375_v6 = vld [vmem:[%s3702_s0 + $0x94] sm:$0xf] }
 0x365   :  { %v2244_v4 = vor.u32 %v2375_v6, %v2241_v55 }
 0x366   :  { %1873 = vst [vmem:[%s3703_s2] sm:$0xff] %v1841_v57 }
 0x367   :  { %v1667_v61 = vpop.f32.mrf.mxu1 }
 0x368   :  { %v1668_v7 = vadd.f32 %v1667_v61, %v1578_v26  ;;  %v1593_v26 = vpop.f32.mrf.mxu0 }
 0x36a   :  { %v1810_v23 = vmul.f32 0.3361756, %v1668_v7 }
 0x36c   :  { %v1842_v49 = vadd.f32 %v1810_v23, %v3067_v12  ;;  %v2263_v12 = vld [vmem:[%s3702_s0 + $0xc0] sm:$0xf] }
 0x36e   :  { %1874 = vst [vmem:[%s3703_s2 + $0x8] sm:$0xff] %v1842_v49 }
 0x36f   :  { %v1670_v11 = vpop.f32.mrf.mxu1 }
 0x370   :  { %v1671_v5 = vadd.f32 %v1670_v11, %v1581_v34  ;;  %v1596_v60 = vpop.f32.mrf.mxu0  ;;  %v2264_v34 = vor.u32 %v2382_v24, %v2263_v12  ;;  %v2265_v24 = vld [vmem:[%s3702_s0 + $0xc8] sm:$0xf0] }
 0x372   :  { %v1811_v1 = vmul.f32 0.3361756, %v1671_v5  ;;  %1709 = vmatmul.bf16.gmra.mxu1 %v2244_v4  ;;  %1635 = vmatmul.bf16.gmra.mxu0 %v2264_v34 }
 0x374   :  { %v1843_v25 = vadd.f32 %v1811_v1, %v3080_v58  ;;  %v2377_v58 = vld [vmem:[%s3702_s0 + $0xa4] sm:$0xf]  ;;  %v2386_v1 = vld [vmem:[%s3702_s0 + $0xe4] sm:$0xf0] }
 0x375   :  { %v2252_v8 = vor.u32 %v2377_v58, %v2249_v9 }
 0x376   :  { %1875 = vst [vmem:[%s3703_s2 + $0x10] sm:$0xff] %v1843_v25 }
 0x377   :  { %v1672_v27 = vpop.f32.mrf.mxu1 }
 0x378   :  { %v1673_v52 = vadd.f32 %v1672_v27, %v1583_v39  ;;  %v1598_v39 = vpop.f32.mrf.mxu0 }
 0x37a   :  { %v1812_v56 = vmul.f32 0.3361756, %v1673_v52 }
 0x37c   :  { %v1844_v13 = vadd.f32 %v1812_v56, %v3095_v21  ;;  %v2271_v21 = vld [vmem:[%s3702_s0 + $0xd0] sm:$0xf] }
 0x37e   :  { %1876 = vst [vmem:[%s3703_s2 + $0x18] sm:$0xff] %v1844_v13 }
 0x37f   :  { %v1675_v32 = vpop.f32.mrf.mxu1 }
 0x380   :  { %v1676_v50 = vadd.f32 %v1675_v32, %v1586_v42  ;;  %v1601_v61 = vpop.f32.mrf.mxu0  ;;  %v2272_v42 = vor.u32 %v2384_v35, %v2271_v21  ;;  %v2388_v32 = vld [vmem:[%s3702_s0 + $0xf4] sm:$0xf0] }
 0x382   :  { %v1813_v62 = vmul.f32 0.3361756, %v1676_v50  ;;  %1714 = vmatmul.bf16.gmra.mxu1 %v2252_v8  ;;  %1640 = vmatmul.bf16.gmra.mxu0 %v2272_v42 }
 0x384   :  { %v1845_v31 = vadd.f32 %v1813_v62, %v3108_v14  ;;  %v2379_v14 = vld [vmem:[%s3702_s0 + $0xb4] sm:$0xf] }
 0x385   :  { %v2260_v6 = vor.u32 %v2379_v14, %v2257_v36 }
 0x386   :  { %1877 = vst [vmem:[%s3703_s2 + $0x20] sm:$0xff] %v1845_v31  ;;  %v2273_v31 = vld [vmem:[%s3702_s0 + $0xd8] sm:$0xf0] }
 0x387   :  { %v1677_v57 = vpop.f32.mrf.mxu1 }
 0x388   :  { %v1678_v44 = vadd.f32 %v1677_v57, %v1588_v19  ;;  %v1603_v19 = vpop.f32.mrf.mxu0 }
 0x38a   :  { %v1814_v7 = vmul.f32 0.3361756, %v1678_v44 }
 0x38c   :  { %v1846_v23 = vadd.f32 %v1814_v7, %v3123_v51  ;;  %v2279_v51 = vld [vmem:[%s3702_s0 + $0xe0] sm:$0xf] }
 0x38d   :  { %v2280_v27 = vor.u32 %v2386_v1, %v2279_v51 }
 0x38e   :  { %1878 = vst [vmem:[%s3703_s2 + $0x28] sm:$0xff] %v1846_v23 }
 0x38f   :  { %v1680_v55 = vpop.f32.mrf.mxu1 }
 0x390   :  { %v1681_v49 = vadd.f32 %v1680_v55, %v1591_v46  ;;  %v1606_v46 = vpop.f32.mrf.mxu0 }
 0x392   :  { %v1815_v4 = vmul.f32 0.3361756, %v1681_v49  ;;  %1719 = vmatmul.bf16.gmra.mxu1 %v2260_v6  ;;  %1645 = vmatmul.bf16.gmra.mxu0 %v2280_v27  ;;  %v2385_v6 = vld [vmem:[%s3702_s0 + $0xe4] sm:$0xf]  ;;  %v2289_v27 = vld [vmem:[%s3702_s0 + $0xf8] sm:$0xf0] }
 0x394   :  { %v1847_v11 = vadd.f32 %v1815_v4, %v3136_v22  ;;  %v2381_v22 = vld [vmem:[%s3702_s0 + $0xc4] sm:$0xf] }
 0x395   :  { %v2268_v34 = vor.u32 %v2381_v22, %v2265_v24 }
 0x396   :  { %1879 = vst [vmem:[%s3703_s2 + $0x30] sm:$0xff] %v1847_v11 }
 0x397   :  { %v1682_v5 = vpop.f32.mrf.mxu1 }
 0x398   :  { %v1683_v25 = vadd.f32 %v1682_v5, %v1593_v26  ;;  %v1608_v9 = vpop.f32.mrf.mxu0 }
 0x39a   :  { %v1816_v12 = vmul.f32 0.3361756, %v1683_v25 }
 0x39c   :  { %v1848_v52 = vadd.f32 %v1816_v12, %v3151_v20  ;;  %v2287_v20 = vld [vmem:[%s3702_s0 + $0xf0] sm:$0xf] }
 0x39e   :  { %1880 = vst [vmem:[%s3703_s2 + $0x38] sm:$0xff] %v1848_v52 }
 0x39f   :  { %v1685_v26 = vpop.f32.mrf.mxu1 }
 0x3a0   :  { %v1686_v56 = vadd.f32 %v1685_v26, %v1596_v60  ;;  %v2288_v60 = vor.u32 %v2388_v32, %v2287_v20  ;;  %v1611_v21 = vpop.f32.mrf.mxu0 }
 0x3a2   :  { %v1817_v58 = vmul.f32 0.3361756, %v1686_v56  ;;  %1724 = vmatmul.bf16.gmra.mxu1 %v2268_v34  ;;  %1650 = vmatmul.bf16.gmra.mxu0 %v2288_v60 }
 0x3a4   :  { %v1849_v13 = vadd.f32 %v1817_v58, %v3166_v59  ;;  %v2383_v59 = vld [vmem:[%s3702_s0 + $0xd4] sm:$0xf] }
 0x3a5   :  { %v2276_v35 = vor.u32 %v2383_v59, %v2273_v31  ;;  %v1248_v59 = vmul.f32 0.2895659, %v3251_v54  ;;  %v1216_v31 = vld [vmem:[%s3703_s2 + $0x88] sm:$0xff] }
 0x3a6   :  { %1881 = vst [vmem:[%s3703_s2 + $0x40] sm:$0xff] %v1849_v13  ;;  %v1247_v13 = vmul.f32 0.2895659, %v3246_v18 }
 0x3a7   :  { %v1687_v8 = vpop.f32.mrf.mxu1 }
 0x3a8   :  { %v1688_v50 = vadd.f32 %v1687_v8, %v1598_v39  ;;  %v1613_v36 = vpop.f32.mrf.mxu0 }
 0x3aa   :  { %v1818_v62 = vmul.f32 0.3361756, %v1688_v50 }
 0x3ac   :  { %v1850_v57 = vadd.f32 %v1818_v62, %v3181_v48 }
 0x3ae   :  { %1882 = vst [vmem:[%s3703_s2 + $0x48] sm:$0xff] %v1850_v57 }
 0x3af   :  { %v1690_v39 = vpop.f32.mrf.mxu1 }
 0x3b0   :  { %v1691_v44 = vadd.f32 %v1690_v39, %v1601_v61  ;;  %v2281_v61 = vld [vmem:[%s3702_s0 + $0xe8] sm:$0xf0]  ;;  %v1616_v11 = vpop.f32.mrf.mxu0 }
 0x3b2   :  { %v1819_v42 = vmul.f32 0.3361756, %v1691_v44  ;;  %1729 = vmatmul.bf16.gmra.mxu1 %v2276_v35  ;;  %v1249_v44 = vmul.f32 0.2895659, %v3258_v2 }
 0x3b4   :  { %v1851_v7 = vadd.f32 %v1819_v42, %v3196_v33  ;;  %v2284_v33 = vor.u32 %v2385_v6, %v2281_v61  ;;  %v1250_v6 = vmul.f32 0.2895659, %v3266_v38 }
 0x3b6   :  { %1883 = vst [vmem:[%s3703_s2 + $0x50] sm:$0xff] %v1851_v7  ;;  %v1217_v7 = vld [vmem:[%s3703_s2 + $0x90] sm:$0xff] }
 0x3b7   :  { %v1692_v14 = vpop.f32.mrf.mxu1 }
 0x3b8   :  { %v1693_v23 = vadd.f32 %v1692_v14, %v1603_v19  ;;  %v1281_v14 = vadd.f32 %v1249_v44, %v1217_v7 }
 0x3ba   :  { %v1820_v48 = vmul.f32 0.3361756, %v1693_v23 }
 0x3bc   :  { %v1852_v55 = vadd.f32 %v1820_v48, %v3208_v10  ;;  %v2387_v10 = vld [vmem:[%s3702_s0 + $0xf4] sm:$0xf] }
 0x3be   :  { %1884 = vst [vmem:[%s3703_s2 + $0x58] sm:$0xff] %v1852_v55  ;;  %v1218_v55 = vld [vmem:[%s3703_s2 + $0x98] sm:$0xff] }
 0x3bf   :  { %v1695_v49 = vpop.f32.mrf.mxu1 }
 0x3c0   :  { %v1696_v4 = vadd.f32 %v1695_v49, %v1606_v46  ;;  %v1618_v46 = vpop.f32.mrf.mxu0 }
 0x3c2   :  { %v1821_v19 = vmul.f32 0.3361756, %v1696_v4  ;;  %1734 = vmatmul.bf16.gmra.mxu1 %v2284_v33  ;;  %v1282_v33 = vadd.f32 %v1250_v6, %v1218_v55 }
 0x3c4   :  { %v1853_v5 = vadd.f32 %v1821_v19, %v3220_v29  ;;  %v2292_v29 = vor.u32 %v2387_v10, %v2289_v27  ;;  %v1251_v19 = vmul.f32 0.2895659, %v3273_v16  ;;  %v1252_v27 = vmul.f32 0.2895659, %v3275_v41 }
 0x3c6   :  { %1885 = vst [vmem:[%s3703_s2 + $0x60] sm:$0xff] %v1853_v5 }
 0x3c7   :  { %v1697_v51 = vpop.f32.mrf.mxu1 }
 0x3c8   :  { %v1698_v1 = vadd.f32 %v1697_v51, %v1608_v9  ;;  %v1621_v26 = vpop.f32.mrf.mxu0  ;;  %v1219_v51 = vld [vmem:[%s3703_s2 + $0xa0] sm:$0xff] }
 0x3ca   :  { %v1822_v25 = vmul.f32 0.3361756, %v1698_v1  ;;  %v1283_v1 = vadd.f32 %v1251_v19, %v1219_v51 }
 0x3cc   :  { %v1854_v12 = vadd.f32 %v1822_v25, %v3232_v37 }
 0x3ce   :  { %1886 = vst [vmem:[%s3703_s2 + $0x68] sm:$0xff] %v1854_v12 }
 0x3cf   :  { %v1700_v22 = vpop.f32.mrf.mxu1 }
 0x3d0   :  { %v1701_v24 = vadd.f32 %v1700_v22, %v1611_v21  ;;  %v1623_v20 = vpop.f32.mrf.mxu0  ;;  %v1280_v21 = vadd.f32 %v1248_v59, %v1216_v31 }
 0x3d2   :  { %v1823_v52 = vmul.f32 0.3361756, %v1701_v24  ;;  %1739 = vmatmul.bf16.gmra.mxu1 %v2292_v29  ;;  %v1220_v29 = vld [vmem:[%s3703_s2 + $0xa8] sm:$0xff] }
 0x3d3   :  { %v1284_v22 = vadd.f32 %v1252_v27, %v1220_v29 }
 0x3d4   :  { %v1855_v34 = vadd.f32 %v1823_v52, %v3238_v15  ;;  %v1215_v15 = vld [vmem:[%s3703_s2 + $0x80] sm:$0xff] }
 0x3d5   :  { %v1279_v50 = vadd.f32 %v1247_v13, %v1215_v15 }
 0x3d6   :  { %1887 = vst [vmem:[%s3703_s2 + $0x70] sm:$0xff] %v1855_v34  ;;  %v1253_v34 = vmul.f32 0.2895659, %v3279_v30 }
 0x3d7   :  { %v1702_v56 = vpop.f32.mrf.mxu1 }
 0x3d8   :  { %v1703_v58 = vadd.f32 %v1702_v56, %v1613_v36  ;;  %v1626_v57 = vpop.f32.mrf.mxu0  ;;  %v1221_v56 = vld [vmem:[%s3703_s2 + $0xb0] sm:$0xff] }
 0x3da   :  { %v1824_v9 = vmul.f32 0.3361756, %v1703_v58 }
 0x3dc   :  { %v1856_v37 = vadd.f32 %v1824_v9, %v3244_v3  ;;  %v1285_v9 = vadd.f32 %v1253_v34, %v1221_v56 }
 0x3de   :  { %1888 = vst [vmem:[%s3703_s2 + $0x78] sm:$0xff] %v1856_v37 }
 0x3df   :  { %v1705_v8 = vpop.f32.mrf.mxu1 }
 0x3e0   :  { %v1706_v32 = vadd.f32 %v1705_v8, %v1616_v11  ;;  %v1628_v23 = vpop.f32.mrf.mxu0 }
 0x3e2   :  { %v1825_v60 = vmul.f32 0.3361756, %v1706_v32 }
 0x3e4   :  { %v1857_v62 = vadd.f32 %v1825_v60, %v1279_v50 }
 0x3e6   :  { %1889 = vst [vmem:[%s3703_s2 + $0x80] sm:$0xff] %v1857_v62 }
 0x3e7   :  { %v1707_v3 = vpop.f32.mrf.mxu1 }
 0x3e8   :  { %v1708_v18 = vadd.f32 %v1707_v3, %v1618_v46  ;;  %v1631_v11 = vpop.f32.mrf.mxu0 }
 0x3ea   :  { %v1826_v35 = vmul.f32 0.3361756, %v1708_v18 }
 0x3ec   :  { %v1858_v39 = vadd.f32 %v1826_v35, %v1280_v21 }
 0x3ee   :  { %1890 = vst [vmem:[%s3703_s2 + $0x88] sm:$0xff] %v1858_v39 }
 0x3ef   :  { %v1710_v54 = vpop.f32.mrf.mxu1 }
 0x3f0   :  { %v1711_v42 = vadd.f32 %v1710_v54, %v1621_v26  ;;  %v1633_v46 = vpop.f32.mrf.mxu0 }
 0x3f2   :  { %v1827_v36 = vmul.f32 0.3361756, %v1711_v42 }
 0x3f4   :  { %v1859_v48 = vadd.f32 %v1827_v36, %v1281_v14 }
 0x3f6   :  { %1891 = vst [vmem:[%s3703_s2 + $0x90] sm:$0xff] %v1859_v48 }
 0x3f7   :  { %v1712_v2 = vpop.f32.mrf.mxu1 }
 0x3f8   :  { %v1713_v61 = vadd.f32 %v1712_v2, %v1623_v20  ;;  %v1636_v58 = vpop.f32.mrf.mxu0 }
 0x3fa   :  { %v1828_v49 = vmul.f32 0.3361756, %v1713_v61 }
 0x3fc   :  { %v1860_v4 = vadd.f32 %v1828_v49, %v1282_v33 }
 0x3fe   :  { %1892 = vst [vmem:[%s3703_s2 + $0x98] sm:$0xff] %v1860_v4 }
 0x3ff   :  { %v1715_v38 = vpop.f32.mrf.mxu1 }
 0x400   :  { %v1716_v5 = vadd.f32 %v1715_v38, %v1626_v57  ;;  %v1638_v32 = vpop.f32.mrf.mxu0 }
 0x402   :  { %v1829_v25 = vmul.f32 0.3361756, %v1716_v5 }
 0x404   :  { %v1861_v10 = vadd.f32 %v1829_v25, %v1283_v1 }
 0x406   :  { %1893 = vst [vmem:[%s3703_s2 + $0xa0] sm:$0xff] %v1861_v10 }
 0x407   :  { %v1717_v16 = vpop.f32.mrf.mxu1 }
 0x408   :  { %v1718_v12 = vadd.f32 %v1717_v16, %v1628_v23  ;;  %v1641_v3 = vpop.f32.mrf.mxu0 }
 0x40a   :  { %v1830_v24 = vmul.f32 0.3361756, %v1718_v12 }
 0x40c   :  { %v1862_v52 = vadd.f32 %v1830_v24, %v1284_v22 }
 0x40e   :  { %1894 = vst [vmem:[%s3703_s2 + $0xa8] sm:$0xff] %v1862_v52 }
 0x40f   :  { %v1720_v41 = vpop.f32.mrf.mxu1 }
 0x410   :  { %v1721_v26 = vadd.f32 %v1720_v41, %v1631_v11  ;;  %v1643_v35 = vpop.f32.mrf.mxu0 }
 0x412   :  { %v1831_v37 = vmul.f32 0.3361756, %v1721_v26 }
 0x414   :  { %v1863_v13 = vadd.f32 %v1831_v37, %v1285_v9 }
 0x416   :  { %1895 = vst [vmem:[%s3703_s2 + $0xb0] sm:$0xff] %v1863_v13 }
 0x417   :  { %v1722_v8 = vpop.f32.mrf.mxu1 }
 0x418   :  { %v1723_v30 = vadd.f32 %v1722_v8, %v1633_v46  ;;  %v1646_v7 = vpop.f32.mrf.mxu0 }
 0x41a   :  { %v1832_v20 = vmul.f32 0.3361756, %v1723_v30 }
 0x41c   :  { %v1864_v15 = vadd.f32 %v1832_v20, %v3290_v63 }
 0x41e   :  { %1896 = vst [vmem:[%s3703_s2 + $0xb8] sm:$0xff] %v1864_v15 }
 0x41f   :  { %v1725_v50 = vpop.f32.mrf.mxu1 }
 0x420   :  { %v1726_v60 = vadd.f32 %v1725_v50, %v1636_v58  ;;  %v1648_v6 = vpop.f32.mrf.mxu0 }
 0x422   :  { %v1833_v62 = vmul.f32 0.3361756, %v1726_v60 }
 0x424   :  { %v1865_v59 = vadd.f32 %v1833_v62, %v3299_v53 }
 0x426   :  { %1897 = vst [vmem:[%s3703_s2 + $0xc0] sm:$0xff] %v1865_v59 }
 0x427   :  { %v1727_v18 = vpop.f32.mrf.mxu1 }
 0x428   :  { %v1728_v31 = vadd.f32 %v1727_v18, %v1638_v32 }
 0x42a   :  { %v1834_v57 = vmul.f32 0.3361756, %v1728_v31 }
 0x42c   :  { %v1866_v21 = vadd.f32 %v1834_v57, %v3308_v43 }
 0x42e   :  { %1898 = vst [vmem:[%s3703_s2 + $0xc8] sm:$0xff] %v1866_v21 }
 0x42f   :  { %v1730_v63 = vpop.f32.mrf.mxu1 }
 0x430   :  { %v1731_v39 = vadd.f32 %v1730_v63, %v1641_v3 }
 0x432   :  { %v1835_v44 = vmul.f32 0.3361756, %v1731_v39 }
 0x434   :  { %v1867_v53 = vadd.f32 %v1835_v44, %v3314_v0 }
 0x436   :  { %1899 = vst [vmem:[%s3703_s2 + $0xd0] sm:$0xff] %v1867_v53 }
 0x437   :  { %v1732_v54 = vpop.f32.mrf.mxu1 }
 0x438   :  { %v1733_v42 = vadd.f32 %v1732_v54, %v1643_v35 }
 0x43a   :  { %v1836_v14 = vmul.f32 0.3361756, %v1733_v42 }
 0x43c   :  { %v1868_v43 = vadd.f32 %v1836_v14, %v3320_v17  ;;  %v1651_v17 = vpop.f32.mrf.mxu0 }
 0x43e   :  { %1900 = vst [vmem:[%s3703_s2 + $0xd8] sm:$0xff] %v1868_v43 }
 0x43f   :  { %v1735_v36 = vpop.f32.mrf.mxu1 }
 0x440   :  { %v1736_v23 = vadd.f32 %v1735_v36, %v1646_v7 }
 0x442   :  { %v1837_v48 = vmul.f32 0.3361756, %v1736_v23 }
 0x444   :  { %v1869_v0 = vadd.f32 %v1837_v48, %v3326_v47  ;;  %v1653_v47 = vpop.f32.mrf.mxu0 }
 0x446   :  { %1901 = vst [vmem:[%s3703_s2 + $0xe0] sm:$0xff] %v1869_v0 }
 0x447   :  { %v1737_v2 = vpop.f32.mrf.mxu1 }
 0x448   :  { %v1738_v61 = vadd.f32 %v1737_v2, %v1648_v6 }
 0x44a   :  { %v1838_v55 = vmul.f32 0.3361756, %v1738_v61 }
 0x44c   :  { %v1870_v33 = vadd.f32 %v1838_v55, %v3332_v40 }
 0x44e   :  { %1902 = vst [vmem:[%s3703_s2 + $0xe8] sm:$0xff] %v1870_v33 }
 0x44f   :  { %v1740_v49 = vpop.f32.mrf.mxu1 }
 0x450   :  { %v1741_v4 = vadd.f32 %v1740_v49, %v1651_v17 }
 0x452   :  { %v1839_v11 = vmul.f32 0.3361756, %v1741_v4 }
 0x454   :  { %v1871_v19 = vadd.f32 %v1839_v11, %v3347_v45 }
 0x456   :  { %1903 = vst [vmem:[%s3703_s2 + $0xf0] sm:$0xff] %v1871_v19 }
 0x457   :  { %v1742_v38 = vpop.f32.mrf.mxu1 }
 0x458   :  { %v1743_v5 = vadd.f32 %v1742_v38, %v1653_v47 }
 0x45a   :  { %v1840_v51 = vmul.f32 0.3361756, %v1743_v5 }
 0x45c   :  { %v1872_v40 = vadd.f32 %v1840_v51, %v3350_v28 }
 0x45e   :  { %1904 = vst [vmem:[%s3703_s2 + $0xf8] sm:$0xff] %v1872_v40 }

</bundles_post_ra>
